<compile_context>
chip_gen: v5e
topology: v5e:2x2
jax: 0.10.0
libtpu: 0.0.40
codegen_flags: <defaults>
</compile_context>

<pallas_src>
import functools

import jax
import jax.numpy as jnp
from jax import lax
from jax.experimental import pallas as pl
from jax.experimental.pallas import tpu as pltpu


# Generation-aware budget: fits v5e/v6e scoped defaults and leaves headroom on
# v7x's 64 MiB physical VMEM per TensorCore.
_VMEM_LIMIT = 32 * 1024 * 1024


def _round_up(x, m):
    return (x + m - 1) // m * m


def _cdiv(a, b):
    return (a + b - 1) // b


# ---------------------------------------------------------------------------
# Pallas kernels
# ---------------------------------------------------------------------------

def _conv_im2col_bias_relu_kernel(x_ref, w_ref, b_ref, o_ref):
    """Fused 3x3 stride-2 conv (single merged-K matmul) + bias + ReLU.

    x_ref: (tm, Kp)    bf16  -- im2col rows (taps concatenated on channels)
    w_ref: (Kp, Cout)  bf16  -- (kh, kw, cin)-major weights (zero-padded rows)
    b_ref: (1, Cout)   f32
    o_ref: (tm, Cout)  bf16  -- channels-last, lane-dense output tile
    """
    acc = jnp.dot(x_ref[...], w_ref[...], preferred_element_type=jnp.float32)
    acc = acc + b_ref[...]
    o_ref[...] = jnp.maximum(acc, 0.0).astype(o_ref.dtype)


def _gap_fc_kernel(x_ref, w_ref, b_ref, o_ref, *, inv_hw):
    """Fused AdaptiveAvgPool2d((1,1)) + Linear.

    x_ref: (tb, HW, C) bf16 ; w_ref: (C, D) bf16 ; b_ref: (1, D) f32
    o_ref: (tb, D)     f32
    """
    feat = jnp.sum(x_ref[...].astype(jnp.float32), axis=1) * inv_hw
    y = jnp.dot(feat.astype(jnp.bfloat16), w_ref[...],
                preferred_element_type=jnp.float32) + b_ref[...]
    o_ref[...] = y.astype(o_ref.dtype)


# ---------------------------------------------------------------------------
# Pallas wrappers
# ---------------------------------------------------------------------------

def conv3x3s2_relu_pallas(x, w, b, *, tm_max=1024):
    """Conv2d(k=3, stride=2, pad=1) + ReLU on NHWC input, bf16 NHWC output.

    The 9 stride-2 taps of the padded input are concatenated along channels
    into an (M, 9*Cin) im2col operand (built as XLA views; allow_input_fusion
    lets XLA fuse the preceding maxpool/pad/gather into the pallas operand
    instead of materializing the slab), then contracted in ONE bf16 MXU
    matmul with f32 accumulation, + bias + ReLU, tiled/pipelined over M.
    """
    N, H, W, Cin = x.shape
    Cout = w.shape[0]
    OH = (H + 2 - 3) // 2 + 1
    OW = (W + 2 - 3) // 2 + 1
    M = N * OH * OW
    K = 9 * Cin
    K_pad = _round_up(K, 8)        # conv1: 27 -> 32, so lanes are never 3-wide

    xp = jnp.pad(x, ((0, 0), (1, 1), (1, 1), (0, 0)))
    taps = []
    for kh in range(3):
        for kw in range(3):
            t = xp[:, kh:kh + 2 * OH - 1:2, kw:kw + 2 * OW - 1:2, :]
            taps.append(t.reshape(M, Cin))
    im2col = jnp.concatenate(taps, axis=-1)                 # (M, 9*Cin)
    if im2col.dtype != jnp.bfloat16:
        im2col = im2col.astype(jnp.bfloat16)

    # >= 2 grid steps whenever M allows it (keeps both v7x TensorCores busy);
    # tm_max=1024 keeps double-buffered bf16 tiles small on every generation.
    tm = min(tm_max, max(8, _round_up(_cdiv(M, 2), 8)))
    M_pad = _round_up(M, tm)
    im2col = jnp.pad(im2col, ((0, M_pad - M), (0, K_pad - K)))

    # torch weight (Cout, Cin, KH, KW) -> (KH, KW, Cin) row-major x Cout
    w2 = jnp.transpose(w, (2, 3, 1, 0)).reshape(K, Cout).astype(jnp.bfloat16)
    w2 = jnp.pad(w2, ((0, K_pad - K), (0, 0)))              # (K_pad, Cout)
    b2 = b.reshape(1, Cout).astype(jnp.float32)

    out = pl.pallas_call(
        _conv_im2col_bias_relu_kernel,
        out_shape=jax.ShapeDtypeStruct((M_pad, Cout), jnp.bfloat16),
        grid=(M_pad // tm,),
        in_specs=[
            pl.BlockSpec((tm, K_pad), lambda i: (i, 0)),
            pl.BlockSpec((K_pad, Cout), lambda i: (0, 0)),   # stays resident
            pl.BlockSpec((1, Cout), lambda i: (0, 0)),
        ],
        out_specs=pl.BlockSpec((tm, Cout), lambda i: (i, 0)),
        compiler_params=pltpu.CompilerParams(
            dimension_semantics=("parallel",),
            vmem_limit_bytes=_VMEM_LIMIT,
            allow_input_fusion=[True, False, False],
        ),
    )(im2col, w2, b2)

    return out[:M].reshape(N, OH, OW, Cout)


def maxpool2_nhwc(x):
    """MaxPool2d(kernel_size=2), floor mode, on NHWC (bf16 in, bf16 out).

    Pure-XLA max of the 4 strided views; with allow_input_fusion it fuses
    into the next conv's im2col operand, so no extra HBM round trip.
    """
    N, H, W, C = x.shape
    PH, PW = H // 2, W // 2
    x = x[:, :2 * PH, :2 * PW, :]
    return jnp.maximum(
        jnp.maximum(x[:, 0::2, 0::2, :], x[:, 0::2, 1::2, :]),
        jnp.maximum(x[:, 1::2, 0::2, :], x[:, 1::2, 1::2, :]),
    )


def gap_fc_pallas(x, wfc, bfc, *, tb_max=256):
    """AdaptiveAvgPool2d((1,1)) + Linear fused into one Pallas kernel."""
    N, H, W, C = x.shape
    HW = H * W
    D = wfc.shape[0]
    xr = x.reshape(N, HW, C).astype(jnp.bfloat16)

    tb = min(tb_max, max(8, _round_up(_cdiv(N, 2), 8)))
    N_pad = _round_up(N, tb)
    if N_pad != N:
        xr = jnp.pad(xr, ((0, N_pad - N), (0, 0), (0, 0)))

    wmat = wfc.T.astype(jnp.bfloat16)             # (C, D)
    b2 = bfc.reshape(1, D).astype(jnp.float32)

    kern = functools.partial(_gap_fc_kernel, inv_hw=1.0 / float(HW))
    out = pl.pallas_call(
        kern,
        out_shape=jax.ShapeDtypeStruct((N_pad, D), jnp.float32),
        grid=(N_pad // tb,),
        in_specs=[
            pl.BlockSpec((tb, HW, C), lambda i: (i, 0, 0)),
            pl.BlockSpec((C, D), lambda i: (0, 0)),
            pl.BlockSpec((1, D), lambda i: (0, 0)),
        ],
        out_specs=pl.BlockSpec((tb, D), lambda i: (i, 0)),
        compiler_params=pltpu.CompilerParams(
            dimension_semantics=("parallel",),
            vmem_limit_bytes=_VMEM_LIMIT,
            allow_input_fusion=[True, False, False],
        ),
    )(xr, wmat, b2)
    return out[:N]


# ---------------------------------------------------------------------------
# Full module forward
# ---------------------------------------------------------------------------

def init_params(key, output_dim):
    ks = jax.random.split(key, 8)

    def uni(k, shape, fan_in):
        bound = 1.0 / jnp.sqrt(float(fan_in))
        return jax.random.uniform(k, shape, jnp.float32, -bound, bound)

    return {
        "w1": uni(ks[0], (64, 3, 3, 3), 3 * 9),
        "b1": uni(ks[1], (64,), 3 * 9),
        "w2": uni(ks[2], (128, 64, 3, 3), 64 * 9),
        "b2": uni(ks[3], (128,), 64 * 9),
        "w3": uni(ks[4], (256, 128, 3, 3), 128 * 9),
        "b3": uni(ks[5], (256,), 128 * 9),
        "wfc": uni(ks[6], (output_dim, 256), 256),
        "bfc": uni(ks[7], (output_dim,), 256),
    }


@jax.jit
def video_feature_extractor(x, params):
    B, C, T, H, W = x.shape
    # PyTorch does a raw row-major reshape here (NOT a permute); reproduce it.
    x = x.reshape(B * T, C, H, W)
    # Go channels-last once; every Pallas kernel below is lane-dense in C.
    x = jnp.transpose(x, (0, 2, 3, 1))                            # (B*T, H, W, C)

    x = conv3x3s2_relu_pallas(x, params["w1"], params["b1"])      # bf16 (N,H/2,W/2,64)
    x = maxpool2_nhwc(x)
    x = conv3x3s2_relu_pallas(x, params["w2"], params["b2"])
    x = maxpool2_nhwc(x)
    x = conv3x3s2_relu_pallas(x, params["w3"], params["b3"])

    feats = gap_fc_pallas(x, params["wfc"], params["bfc"])        # (B*T, D) f32
    return feats.reshape(B, T, -1)


# ---------------------------------------------------------------------------
# Pure-JAX reference (for correctness check)
# ---------------------------------------------------------------------------

def _ref_forward(x, params):
    B, C, T, H, W = x.shape
    y = x.reshape(B * T, C, H, W)

    def conv(y, w, b):
        out = lax.conv_general_dilated(
            y, w, window_strides=(2, 2), padding=((1, 1), (1, 1)),
            dimension_numbers=("NCHW", "OIHW", "NCHW"))
        return jax.nn.relu(out + b[None, :, None, None])

    def pool(y):
        return lax.reduce_window(y, -jnp.inf, lax.max,
                                 (1, 1, 2, 2), (1, 1, 2, 2), "VALID")

    y = conv(y, params["w1"], params["b1"]); y = pool(y)
    y = conv(y, params["w2"], params["b2"]); y = pool(y)
    y = conv(y, params["w3"], params["b3"])
    y = jnp.mean(y, axis=(2, 3))
    y = y @ params["wfc"].T + params["bfc"]
    return y.reshape(B, T, -1)


# ---------------------------------------------------------------------------
if __name__ == "__main__":
    key = jax.random.PRNGKey(0)
    k_x, k_p = jax.random.split(key)

    B, C, T, H, W = 2, 3, 4, 16, 16
    output_dim = 32

    x = jax.random.normal(k_x, (B, C, T, H, W), dtype=jnp.float32)
    params = init_params(k_p, output_dim)

    out = video_feature_extractor(x, params)
    out = jax.block_until_ready(out)

    assert out.shape == (B, T, output_dim), out.shape
    assert out.dtype == jnp.float32

    ref = _ref_forward(x, params)
    assert jnp.allclose(out, ref, rtol=1e-1, atol=1e-1), (
        float(jnp.max(jnp.abs(out - ref))))

    print("KERNEL_OK")
</pallas_src>

<mosaic_0001>
module attributes {stable_mosaic.version = 11 : i64} {
  func.func @_conv_im2col_bias_relu_kernel(%arg0: i32, %arg1: memref<256x32xbf16, #tpu.memory_space<vmem>>, %arg2: memref<32x64xbf16, #tpu.memory_space<vmem>>, %arg3: memref<1x64xf32, #tpu.memory_space<vmem>>, %arg4: memref<256x64xbf16, #tpu.memory_space<vmem>>) attributes {dimension_semantics = [#tpu.dimension_semantics<parallel>], iteration_bounds = array<i64: 2>, scalar_prefetch = 0 : i64, scratch_operands = 0 : i64, tpu.core_type = #tpu.core_type<tc>, window_params = [{transform_indices = @transform_0, window_bounds = array<i64: 256, 32>}, {pipeline_mode = #tpu.pipeline_mode<synchronous>, transform_indices = @transform_1, window_bounds = array<i64: 32, 64>}, {pipeline_mode = #tpu.pipeline_mode<synchronous>, transform_indices = @transform_2, window_bounds = array<i64: 1, 64>}, {transform_indices = @transform_3, window_bounds = array<i64: 256, 64>}]} {
    %c0 = arith.constant 0 : index
    %c0_0 = arith.constant 0 : index
    %0 = vector.load %arg1[%c0, %c0_0] : memref<256x32xbf16, #tpu.memory_space<vmem>>, vector<256x32xbf16>
    %c0_1 = arith.constant 0 : index
    %c0_2 = arith.constant 0 : index
    %1 = vector.load %arg2[%c0_1, %c0_2] : memref<32x64xbf16, #tpu.memory_space<vmem>>, vector<32x64xbf16>
    %cst = arith.constant dense<0.000000e+00> : vector<256x64xf32>
    %2 = tpu.matmul %0, %1, %cst {dimension_numbers = #tpu.dot_dimension_numbers<[1], [0], [0], [1], [0, 0, 1, 1], [], []>} : vector<256x32xbf16>, vector<32x64xbf16>, vector<256x64xf32> -> vector<256x64xf32>
    %c0_3 = arith.constant 0 : index
    %c0_4 = arith.constant 0 : index
    %3 = vector.load %arg3[%c0_3, %c0_4] : memref<1x64xf32, #tpu.memory_space<vmem>>, vector<1x64xf32>
    %4 = vector.broadcast %3 : vector<1x64xf32> to vector<256x64xf32>
    %5 = arith.addf %2, %4 : vector<256x64xf32>
    %cst_5 = arith.constant 0.000000e+00 : f32
    %6 = vector.broadcast %cst_5 : f32 to vector<256x64xf32>
    %7 = arith.maximumf %5, %6 : vector<256x64xf32>
    %8 = arith.truncf %7 : vector<256x64xf32> to vector<256x64xbf16>
    %c0_6 = arith.constant 0 : index
    %c0_7 = arith.constant 0 : index
    %9 = vector.load %arg4[%c0_6, %c0_7] : memref<256x64xbf16, #tpu.memory_space<vmem>>, vector<256x64xbf16>
    tpu.vector_store %arg4[%c0_6, %c0_7], %8 {strides = array<i32>} : memref<256x64xbf16, #tpu.memory_space<vmem>>, vector<256x64xbf16>,
    return
  }
  func.func @transform_0(%arg0: i32) -> (i32, i32) {
    %c0_i32 = arith.constant 0 : i32
    %c0_i32_0 = arith.constant 0 : i32
    return %arg0, %c0_i32 : i32, i32
  }
  func.func @transform_1(%arg0: i32) -> (i32, i32) {
    %c0_i32 = arith.constant 0 : i32
    %c0_i32_0 = arith.constant 0 : i32
    %c0_i32_1 = arith.constant 0 : i32
    return %c0_i32, %c0_i32_0 : i32, i32
  }
  func.func @transform_2(%arg0: i32) -> (i32, i32) {
    %c0_i32 = arith.constant 0 : i32
    %c0_i32_0 = arith.constant 0 : i32
    %c0_i32_1 = arith.constant 0 : i32
    return %c0_i32, %c0_i32_0 : i32, i32
  }
  func.func @transform_3(%arg0: i32) -> (i32, i32) {
    %c0_i32 = arith.constant 0 : i32
    %c0_i32_0 = arith.constant 0 : i32
    return %arg0, %c0_i32 : i32, i32
  }
}

module attributes {stable_mosaic.version = 11 : i64} {
  func.func @_conv_im2col_bias_relu_kernel(%arg0: i32, %arg1: memref<16x576xbf16, #tpu.memory_space<vmem>>, %arg2: memref<576x128xbf16, #tpu.memory_space<vmem>>, %arg3: memref<1x128xf32, #tpu.memory_space<vmem>>, %arg4: memref<16x128xbf16, #tpu.memory_space<vmem>>) attributes {dimension_semantics = [#tpu.dimension_semantics<parallel>], iteration_bounds = array<i64: 2>, scalar_prefetch = 0 : i64, scratch_operands = 0 : i64, tpu.core_type = #tpu.core_type<tc>, window_params = [{transform_indices = @transform_0, window_bounds = array<i64: 16, 576>}, {pipeline_mode = #tpu.pipeline_mode<synchronous>, transform_indices = @transform_1, window_bounds = array<i64: 576, 128>}, {pipeline_mode = #tpu.pipeline_mode<synchronous>, transform_indices = @transform_2, window_bounds = array<i64: 1, 128>}, {transform_indices = @transform_3, window_bounds = array<i64: 16, 128>}]} {
    %c0 = arith.constant 0 : index
    %c0_0 = arith.constant 0 : index
    %0 = vector.load %arg1[%c0, %c0_0] : memref<16x576xbf16, #tpu.memory_space<vmem>>, vector<16x576xbf16>
    %c0_1 = arith.constant 0 : index
    %c0_2 = arith.constant 0 : index
    %1 = vector.load %arg2[%c0_1, %c0_2] : memref<576x128xbf16, #tpu.memory_space<vmem>>, vector<576x128xbf16>
    %cst = arith.constant dense<0.000000e+00> : vector<16x128xf32>
    %2 = tpu.matmul %0, %1, %cst {dimension_numbers = #tpu.dot_dimension_numbers<[1], [0], [0], [1], [0, 0, 1, 1], [], []>} : vector<16x576xbf16>, vector<576x128xbf16>, vector<16x128xf32> -> vector<16x128xf32>
    %c0_3 = arith.constant 0 : index
    %c0_4 = arith.constant 0 : index
    %3 = vector.load %arg3[%c0_3, %c0_4] : memref<1x128xf32, #tpu.memory_space<vmem>>, vector<1x128xf32>
    %4 = vector.broadcast %3 : vector<1x128xf32> to vector<16x128xf32>
    %5 = arith.addf %2, %4 : vector<16x128xf32>
    %cst_5 = arith.constant 0.000000e+00 : f32
    %6 = vector.broadcast %cst_5 : f32 to vector<16x128xf32>
    %7 = arith.maximumf %5, %6 : vector<16x128xf32>
    %8 = arith.truncf %7 : vector<16x128xf32> to vector<16x128xbf16>
    %c0_6 = arith.constant 0 : index
    %c0_7 = arith.constant 0 : index
    %9 = vector.load %arg4[%c0_6, %c0_7] : memref<16x128xbf16, #tpu.memory_space<vmem>>, vector<16x128xbf16>
    tpu.vector_store %arg4[%c0_6, %c0_7], %8 {strides = array<i32>} : memref<16x128xbf16, #tpu.memory_space<vmem>>, vector<16x128xbf16>,
    return
  }
  func.func @transform_0(%arg0: i32) -> (i32, i32) {
    %c0_i32 = arith.constant 0 : i32
    %c0_i32_0 = arith.constant 0 : i32
    return %arg0, %c0_i32 : i32, i32
  }
  func.func @transform_1(%arg0: i32) -> (i32, i32) {
    %c0_i32 = arith.constant 0 : i32
    %c0_i32_0 = arith.constant 0 : i32
    %c0_i32_1 = arith.constant 0 : i32
    return %c0_i32, %c0_i32_0 : i32, i32
  }
  func.func @transform_2(%arg0: i32) -> (i32, i32) {
    %c0_i32 = arith.constant 0 : i32
    %c0_i32_0 = arith.constant 0 : i32
    %c0_i32_1 = arith.constant 0 : i32
    return %c0_i32, %c0_i32_0 : i32, i32
  }
  func.func @transform_3(%arg0: i32) -> (i32, i32) {
    %c0_i32 = arith.constant 0 : i32
    %c0_i32_0 = arith.constant 0 : i32
    return %arg0, %c0_i32 : i32, i32
  }
}

module attributes {stable_mosaic.version = 11 : i64} {
  func.func @_conv_im2col_bias_relu_kernel(%arg0: i32, %arg1: memref<8x1152xbf16, #tpu.memory_space<vmem>>, %arg2: memref<1152x256xbf16, #tpu.memory_space<vmem>>, %arg3: memref<1x256xf32, #tpu.memory_space<vmem>>, %arg4: memref<8x256xbf16, #tpu.memory_space<vmem>>) attributes {dimension_semantics = [#tpu.dimension_semantics<parallel>], iteration_bounds = array<i64: 1>, scalar_prefetch = 0 : i64, scratch_operands = 0 : i64, tpu.core_type = #tpu.core_type<tc>, window_params = [{transform_indices = @transform_0, window_bounds = array<i64: 8, 1152>}, {pipeline_mode = #tpu.pipeline_mode<synchronous>, transform_indices = @transform_1, window_bounds = array<i64: 1152, 256>}, {pipeline_mode = #tpu.pipeline_mode<synchronous>, transform_indices = @transform_2, window_bounds = array<i64: 1, 256>}, {transform_indices = @transform_3, window_bounds = array<i64: 8, 256>}]} {
    %c0 = arith.constant 0 : index
    %c0_0 = arith.constant 0 : index
    %0 = vector.load %arg1[%c0, %c0_0] : memref<8x1152xbf16, #tpu.memory_space<vmem>>, vector<8x1152xbf16>
    %c0_1 = arith.constant 0 : index
    %c0_2 = arith.constant 0 : index
    %1 = vector.load %arg2[%c0_1, %c0_2] : memref<1152x256xbf16, #tpu.memory_space<vmem>>, vector<1152x256xbf16>
    %cst = arith.constant dense<0.000000e+00> : vector<8x256xf32>
    %2 = tpu.matmul %0, %1, %cst {dimension_numbers = #tpu.dot_dimension_numbers<[1], [0], [0], [1], [0, 0, 1, 1], [], []>} : vector<8x1152xbf16>, vector<1152x256xbf16>, vector<8x256xf32> -> vector<8x256xf32>
    %c0_3 = arith.constant 0 : index
    %c0_4 = arith.constant 0 : index
    %3 = vector.load %arg3[%c0_3, %c0_4] : memref<1x256xf32, #tpu.memory_space<vmem>>, vector<1x256xf32>
    %4 = vector.broadcast %3 : vector<1x256xf32> to vector<8x256xf32>
    %5 = arith.addf %2, %4 : vector<8x256xf32>
    %cst_5 = arith.constant 0.000000e+00 : f32
    %6 = vector.broadcast %cst_5 : f32 to vector<8x256xf32>
    %7 = arith.maximumf %5, %6 : vector<8x256xf32>
    %8 = arith.truncf %7 : vector<8x256xf32> to vector<8x256xbf16>
    %c0_6 = arith.constant 0 : index
    %c0_7 = arith.constant 0 : index
    %9 = vector.load %arg4[%c0_6, %c0_7] : memref<8x256xbf16, #tpu.memory_space<vmem>>, vector<8x256xbf16>
    tpu.vector_store %arg4[%c0_6, %c0_7], %8 {strides = array<i32>} : memref<8x256xbf16, #tpu.memory_space<vmem>>, vector<8x256xbf16>,
    return
  }
  func.func @transform_0(%arg0: i32) -> (i32, i32) {
    %c0_i32 = arith.constant 0 : i32
    %c0_i32_0 = arith.constant 0 : i32
    return %arg0, %c0_i32 : i32, i32
  }
  func.func @transform_1(%arg0: i32) -> (i32, i32) {
    %c0_i32 = arith.constant 0 : i32
    %c0_i32_0 = arith.constant 0 : i32
    %c0_i32_1 = arith.constant 0 : i32
    return %c0_i32, %c0_i32_0 : i32, i32
  }
  func.func @transform_2(%arg0: i32) -> (i32, i32) {
    %c0_i32 = arith.constant 0 : i32
    %c0_i32_0 = arith.constant 0 : i32
    %c0_i32_1 = arith.constant 0 : i32
    return %c0_i32, %c0_i32_0 : i32, i32
  }
  func.func @transform_3(%arg0: i32) -> (i32, i32) {
    %c0_i32 = arith.constant 0 : i32
    %c0_i32_0 = arith.constant 0 : i32
    return %arg0, %c0_i32 : i32, i32
  }
}

module attributes {stable_mosaic.version = 11 : i64} {
  func.func @_gap_fc_kernel(%arg0: i32, %arg1: memref<8x1x256xbf16, #tpu.memory_space<vmem>>, %arg2: memref<256x32xbf16, #tpu.memory_space<vmem>>, %arg3: memref<1x32xf32, #tpu.memory_space<vmem>>, %arg4: memref<8x32xf32, #tpu.memory_space<vmem>>) attributes {dimension_semantics = [#tpu.dimension_semantics<parallel>], iteration_bounds = array<i64: 1>, scalar_prefetch = 0 : i64, scratch_operands = 0 : i64, tpu.core_type = #tpu.core_type<tc>, window_params = [{transform_indices = @transform_0, window_bounds = array<i64: 8, 1, 256>}, {pipeline_mode = #tpu.pipeline_mode<synchronous>, transform_indices = @transform_1, window_bounds = array<i64: 256, 32>}, {pipeline_mode = #tpu.pipeline_mode<synchronous>, transform_indices = @transform_2, window_bounds = array<i64: 1, 32>}, {transform_indices = @transform_3, window_bounds = array<i64: 8, 32>}]} {
    %c0 = arith.constant 0 : index
    %c0_0 = arith.constant 0 : index
    %c0_1 = arith.constant 0 : index
    %0 = vector.load %arg1[%c0, %c0_0, %c0_1] : memref<8x1x256xbf16, #tpu.memory_space<vmem>>, vector<8x1x256xbf16>
    %1 = arith.extf %0 : vector<8x1x256xbf16> to vector<8x1x256xf32>
    %cst = arith.constant dense<0.000000e+00> : vector<8x256xf32>
    %2 = vector.multi_reduction <add>, %1, %cst [1] : vector<8x1x256xf32> to vector<8x256xf32>
    %cst_2 = arith.constant 1.000000e+00 : f32
    %3 = vector.broadcast %cst_2 : f32 to vector<8x256xf32>
    %4 = arith.mulf %2, %3 : vector<8x256xf32>
    %5 = arith.truncf %4 : vector<8x256xf32> to vector<8x256xbf16>
    %c0_3 = arith.constant 0 : index
    %c0_4 = arith.constant 0 : index
    %6 = vector.load %arg2[%c0_3, %c0_4] : memref<256x32xbf16, #tpu.memory_space<vmem>>, vector<256x32xbf16>
    %cst_5 = arith.constant dense<0.000000e+00> : vector<8x32xf32>
    %7 = tpu.matmul %5, %6, %cst_5 {dimension_numbers = #tpu.dot_dimension_numbers<[1], [0], [0], [1], [0, 0, 1, 1], [], []>} : vector<8x256xbf16>, vector<256x32xbf16>, vector<8x32xf32> -> vector<8x32xf32>
    %c0_6 = arith.constant 0 : index
    %c0_7 = arith.constant 0 : index
    %8 = vector.load %arg3[%c0_6, %c0_7] : memref<1x32xf32, #tpu.memory_space<vmem>>, vector<1x32xf32>
    %9 = vector.broadcast %8 : vector<1x32xf32> to vector<8x32xf32>
    %10 = arith.addf %7, %9 : vector<8x32xf32>
    %c0_8 = arith.constant 0 : index
    %c0_9 = arith.constant 0 : index
    %11 = vector.load %arg4[%c0_8, %c0_9] : memref<8x32xf32, #tpu.memory_space<vmem>>, vector<8x32xf32>
    tpu.vector_store %arg4[%c0_8, %c0_9], %10 {strides = array<i32>} : memref<8x32xf32, #tpu.memory_space<vmem>>, vector<8x32xf32>,
    return
  }
  func.func @transform_0(%arg0: i32) -> (i32, i32, i32) {
    %c0_i32 = arith.constant 0 : i32
    %c0_i32_0 = arith.constant 0 : i32
    %c0_i32_1 = arith.constant 0 : i32
    return %arg0, %c0_i32, %c0_i32_0 : i32, i32, i32
  }
  func.func @transform_1(%arg0: i32) -> (i32, i32) {
    %c0_i32 = arith.constant 0 : i32
    %c0_i32_0 = arith.constant 0 : i32
    %c0_i32_1 = arith.constant 0 : i32
    return %c0_i32, %c0_i32_0 : i32, i32
  }
  func.func @transform_2(%arg0: i32) -> (i32, i32) {
    %c0_i32 = arith.constant 0 : i32
    %c0_i32_0 = arith.constant 0 : i32
    %c0_i32_1 = arith.constant 0 : i32
    return %c0_i32, %c0_i32_0 : i32, i32
  }
  func.func @transform_3(%arg0: i32) -> (i32, i32) {
    %c0_i32 = arith.constant 0 : i32
    %c0_i32_0 = arith.constant 0 : i32
    return %arg0, %c0_i32 : i32, i32
  }
}

</mosaic_0001>

<bundles_post_ra>
// kernel: video_feature_extractor.8
= control target key start
LH: loop header
LB: loop body
LE: loop exit
PB: predicated region body
PF: predicated region fallthrough
CT: control target
= control target key end

     0   :  { %s1539_s17 = smov 0   ;;  %s1805_s0 = inlined_call_operand.vmem [shape: bf16[32,64], index: 0, kind: input, shape index: {}]   ;;  %s1806_s1 = inlined_call_operand.vmem [shape: f32[1,64], index: 1, kind: input, shape index: {}]   ;;  %s1807_s2 = inlined_call_operand.vmem [shape: bf16[512,27], index: 2, kind: input, shape index: {}]   ;;  %s1808_s3 = inlined_call_operand.<no memory space> [shape: bf16[], index: 3, kind: input, shape index: {}]   ;;  %s1809_s4 = inlined_call_operand.vmem [shape: bf16[512,64], index: 4, kind: output, shape index: {}]  }
   0x1   :  { %v9_v0 = vstv %s1808_s3 }
   0x2   :  { %v1537_v1 = vunpack.i.l.bf16 %v9_v0 }
   0x3 LB: > { %s1338_s18 = sadd.s32 4294967295, %s1507_s17   ;;  %p1342_p0 = scmp.ge.s32.totalorder %s1507_s17, 1  ;;  %s1507_s17 = sphi %s1539_s17, %s19_s17  }
   0x4   : > { %p144_p1 = scmp.lt.s32.totalorder %s1507_s17, 3 }
   0x6   : > { %p145_p2 = pnand %p1342_p0, %p144_p1 }
   0x8   : > { %148 = sbr.rel (%p145_p2) target bundleno = 236 (0xec), region = 32 }
   0xd   : > { %v1485_v2 = vld [vmem:[%s1805_s0 + $0x8] sm:$0xff]  ;;  %s1343_s3 = sshll.u32 %s1338_s18, 5  ;;  %v192_v3 = vlaneseq  ;;  %v1484_v4 = vld [vmem:[%s1805_s0] sm:$0xff]  ;;  %vm1047_vm1 = vcmask 261120   ;;  %vm1249_vm2 = vcmask 519168  }
   0xe   : > { %p169_p3 = scmp.lt.s32.totalorder %s1343_s3, 63  ;;  %1102 = vmatpush.bf16.msra.mxu0 %v1485_v2  ;;  %1486 = vmatpush.bf16.msra.mxu1 %v1485_v2 }
   0xf   : > { %1487 = vmatpush.bf16.msra.mxu2 %v1485_v2  ;;  %1488 = vmatpush.bf16.msra.mxu3 %v1485_v2  ;;  %v1555_v5 = vand.u32 127, %v192_v3 }
  0x10   : > { %s1811_s3 = smov (!%p169_p3, %s1343_s3), 63 }
  0x11   : > { %s1344_s23 = sshll.u32 %s1811_s3, 2  ;;  %vm195_vm0 = vcmp.lt.s32.totalorder %v1555_v5, 27 }
  0x12   : > { %1103 = vmatpush.bf16.msra.mxu0 %v1484_v4  ;;  %1489 = vmatpush.bf16.msra.mxu1 %v1484_v4  ;;  %s1563_s26 = scalar_lea.vmem %s1807_s2, %s1344_s23  ;;  %s1706_s5 = scalar_lea.vmem %s1809_s4, %s1344_s23 }
  0x13   : > { %1490 = vmatpush.bf16.msra.mxu2 %v1484_v4  ;;  %1491 = vmatpush.bf16.msra.mxu3 %v1484_v4  ;;  %v189_v6 = vld [vmem:[%s1563_s26] sm:$0xff]   ;;  %v1348_v26 = vld [vmem:[%s1563_s26 + $0x8] sm:$0xff]   ;;  %v1350_v51 = vld [vmem:[%s1563_s26 + $0x10] sm:$0xff]  }
  0x14   : > { %v1354_v7 = vld [vmem:[%s1563_s26 + $0x20] sm:$0xff]   ;;  %v190_v9 = vunpack.c.l.bf16 %v189_v6  ;;  %v212_v10 = vunpack.c.h.bf16 %v189_v6  ;;  %v1356_v27 = vld [vmem:[%s1563_s26 + $0x28] sm:$0xff]   ;;  %v235_v37 = vunpack.c.l.bf16 %v1348_v26  ;;  %v258_v38 = vunpack.c.h.bf16 %v1348_v26  ;;  %v1358_v52 = vld [vmem:[%s1563_s26 + $0x30] sm:$0xff]  }
  0x15   : > { %v1362_v8 = vld [vmem:[%s1563_s26 + $0x40] sm:$0xff]   ;;  %v373_v11 = vunpack.c.l.bf16 %v1354_v7  ;;  %v396_v12 = vunpack.c.h.bf16 %v1354_v7  ;;  %v1364_v32 = vld [vmem:[%s1563_s26 + $0x48] sm:$0xff]   ;;  %v419_v39 = vunpack.c.l.bf16 %v1356_v27  ;;  %v442_v40 = vunpack.c.h.bf16 %v1356_v27  ;;  %v1366_v58 = vld [vmem:[%s1563_s26 + $0x50] sm:$0xff]  }
  0x16   : > { %v1370_v13 = vld [vmem:[%s1563_s26 + $0x60] sm:$0xff]   ;;  %v557_v14 = vunpack.c.l.bf16 %v1362_v8  ;;  %v580_v15 = vunpack.c.h.bf16 %v1362_v8  ;;  %v196_v18 = vsel %vm195_vm0, %v190_v9, %v1537_v1  ;;  %v218_v19 = vsel %vm195_vm0, %v212_v10, %v1537_v1  ;;  %v1372_v33 = vld [vmem:[%s1563_s26 + $0x68] sm:$0xff]   ;;  %v1374_v63 = vld [vmem:[%s1563_s26 + $0x70] sm:$0xff]  }
  0x17   : > { %v741_v16 = vunpack.c.l.bf16 %v1370_v13  ;;  %v764_v17 = vunpack.c.h.bf16 %v1370_v13  ;;  %v379_v20 = vsel %vm195_vm0, %v373_v11, %v1537_v1  ;;  %v402_v21 = vsel %vm195_vm0, %v396_v12, %v1537_v1 }
  0x18   : > { %v197_v22 = vpack.c.bf16 0.0, %v196_v18  ;;  %v220_v23 = vpack.c.bf16 0.0, %v218_v19  ;;  %v381_v24 = vpack.c.bf16 0.0, %v379_v20  ;;  %v404_v25 = vpack.c.bf16 0.0, %v402_v21 }
  0x19   : > { %v563_v28 = vsel %vm195_vm0, %v557_v14, %v1537_v1  ;;  %v586_v29 = vsel %vm195_vm0, %v580_v15, %v1537_v1  ;;  %v747_v30 = vsel %vm195_vm0, %v741_v16, %v1537_v1  ;;  %v770_v31 = vsel %vm195_vm0, %v764_v17, %v1537_v1 }
  0x1a   : > { %200 = vst [vmem:[#allocation7] sm:$0xf] %v197_v22  ;;  %v565_v34 = vpack.c.bf16 0.0, %v563_v28  ;;  %v588_v35 = vpack.c.bf16 0.0, %v586_v29  ;;  %v749_v36 = vpack.c.bf16 0.0, %v747_v30  ;;  %v772_v41 = vpack.c.bf16 0.0, %v770_v31 }
  0x1b   : > { %223 = vst [vmem:[#allocation7 + $0x4] sm:$0xf] %v220_v23  ;;  %v603_v42 = vunpack.c.l.bf16 %v1364_v32  ;;  %v626_v43 = vunpack.c.h.bf16 %v1364_v32  ;;  %v787_v44 = vunpack.c.l.bf16 %v1372_v33  ;;  %v241_v45 = vsel %vm195_vm0, %v235_v37, %v1537_v1  ;;  %v1352_v30 = vld [vmem:[%s1563_s26 + $0x18] sm:$0xff]  }
  0x1c   : > { %384 = vst [vmem:[#allocation7 + $0x20] sm:$0xf] %v381_v24  ;;  %v264_v46 = vsel %vm195_vm0, %v258_v38, %v1537_v1  ;;  %v425_v47 = vsel %vm195_vm0, %v419_v39, %v1537_v1  ;;  %v448_v48 = vsel %vm195_vm0, %v442_v40, %v1537_v1  ;;  %v243_v49 = vpack.c.bf16 0.0, %v241_v45 }
  0x1d   : > { %407 = vst [vmem:[#allocation7 + $0x24] sm:$0xf] %v404_v25  ;;  %v810_v50 = vunpack.c.h.bf16 %v1372_v33  ;;  %v266_v53 = vpack.c.bf16 0.0, %v264_v46  ;;  %v609_v54 = vsel %vm195_vm0, %v603_v42, %v1537_v1  ;;  %v427_v55 = vpack.c.bf16 0.0, %v425_v47 }
  0x1e   : > { %568 = vst [vmem:[#allocation7 + $0x40] sm:$0xf] %v565_v34  ;;  %v450_v56 = vpack.c.bf16 0.0, %v448_v48  ;;  %v632_v57 = vsel %vm195_vm0, %v626_v43, %v1537_v1  ;;  %v793_v59 = vsel %vm195_vm0, %v787_v44, %v1537_v1  ;;  %v281_v60 = vunpack.c.l.bf16 %v1350_v51  ;;  %v1360_v34 = vld [vmem:[%s1563_s26 + $0x38] sm:$0xff]  }
  0x1f   : > { %591 = vst [vmem:[#allocation7 + $0x44] sm:$0xf] %v588_v35  ;;  %v304_v61 = vunpack.c.h.bf16 %v1350_v51  ;;  %v465_v62 = vunpack.c.l.bf16 %v1358_v52  ;;  %v611_v2 = vpack.c.bf16 0.0, %v609_v54  ;;  %v816_v3 = vsel %vm195_vm0, %v810_v50, %v1537_v1  ;;  %v1368_v35 = vld [vmem:[%s1563_s26 + $0x58] sm:$0xff]  }
  0x20   : > { %752 = vst [vmem:[#allocation7 + $0x60] sm:$0xf] %v749_v36  ;;  %v488_v4 = vunpack.c.h.bf16 %v1358_v52  ;;  %v634_v6 = vpack.c.bf16 0.0, %v632_v57  ;;  %v287_v7 = vsel %vm195_vm0, %v281_v60, %v1537_v1  ;;  %v649_v8 = vunpack.c.l.bf16 %v1366_v58  ;;  %v1376_v36 = vld [vmem:[%s1563_s26 + $0x78] sm:$0xff]  }
  0x21   : > { %775 = vst [vmem:[#allocation7 + $0x64] sm:$0xf] %v772_v41  ;;  %v672_v9 = vunpack.c.h.bf16 %v1366_v58  ;;  %v795_v11 = vpack.c.bf16 0.0, %v793_v59  ;;  %v310_v12 = vsel %vm195_vm0, %v304_v61, %v1537_v1  ;;  %v833_v13 = vunpack.c.l.bf16 %v1374_v63 }
  0x22   : > { %v1468_v0 = vld [vmem:[#allocation7] sm:$0xff]  ;;  %246 = vst [vmem:[#allocation7 + $0x8] sm:$0xf] %v243_v49  ;;  %v818_v14 = vpack.c.bf16 0.0, %v816_v3  ;;  %v471_v15 = vsel %vm195_vm0, %v465_v62, %v1537_v1  ;;  %v289_v17 = vpack.c.bf16 0.0, %v287_v7  ;;  %v494_v18 = vsel %vm195_vm0, %v488_v4, %v1537_v1 }
  0x23   : > { %269 = vst [vmem:[#allocation7 + $0xc] sm:$0xf] %v266_v53  ;;  %1450 = vmatmul.msk.bf16.vlgmr.msra.gmra.mxu0 %vm1047_vm1, %v1468_v0  ;;  %v856_v19 = vunpack.c.h.bf16 %v1374_v63  ;;  %v312_v20 = vpack.c.bf16 0.0, %v310_v12  ;;  %v655_v21 = vsel %vm195_vm0, %v649_v8, %v1537_v1  ;;  %v678_v22 = vsel %vm195_vm0, %v672_v9, %v1537_v1  ;;  %v1697_v9 = vld [vmem:[%s1806_s1] ss:$0 sm:$0xff] }
  0x24   : > { %v1472_v10 = vld [vmem:[#allocation7 + $0x20] sm:$0xff]  ;;  %430 = vst [vmem:[#allocation7 + $0x28] sm:$0xf] %v427_v55  ;;  %v473_v24 = vpack.c.bf16 0.0, %v471_v15  ;;  %v839_v25 = vsel %vm195_vm0, %v833_v13, %v1537_v1  ;;  %v496_v26 = vpack.c.bf16 0.0, %v494_v18  ;;  %v657_v27 = vpack.c.bf16 0.0, %v655_v21 }
  0x25   : > { %453 = vst [vmem:[#allocation7 + $0x2c] sm:$0xf] %v450_v56  ;;  %1454 = vmatmul.msk.bf16.vlgmr.msra.gmra.mxu1 %vm1047_vm1, %v1472_v10  ;;  %v680_v28 = vpack.c.bf16 0.0, %v678_v22  ;;  %v862_v29 = vsel %vm195_vm0, %v856_v19, %v1537_v1  ;;  %v841_v31 = vpack.c.bf16 0.0, %v839_v25  ;;  %v327_v32 = vunpack.c.l.bf16 %v1352_v30 }
  0x26   : > { %v1476_v16 = vld [vmem:[#allocation7 + $0x40] sm:$0xff]  ;;  %614 = vst [vmem:[#allocation7 + $0x48] sm:$0xf] %v611_v2  ;;  %v350_v33 = vunpack.c.h.bf16 %v1352_v30  ;;  %v511_v37 = vunpack.c.l.bf16 %v1360_v34  ;;  %v534_v38 = vunpack.c.h.bf16 %v1360_v34  ;;  %v695_v39 = vunpack.c.l.bf16 %v1368_v35 }
  0x27   : > { %637 = vst [vmem:[#allocation7 + $0x4c] sm:$0xf] %v634_v6  ;;  %1458 = vmatmul.msk.bf16.vlgmr.msra.gmra.mxu2 %vm1047_vm1, %v1476_v16  ;;  %v718_v40 = vunpack.c.h.bf16 %v1368_v35  ;;  %v864_v41 = vpack.c.bf16 0.0, %v862_v29  ;;  %v333_v42 = vsel %vm195_vm0, %v327_v32, %v1537_v1  ;;  %v879_v44 = vunpack.c.l.bf16 %v1376_v36 }
  0x28   : > { %v1480_v23 = vld [vmem:[#allocation7 + $0x60] sm:$0xff]  ;;  %798 = vst [vmem:[#allocation7 + $0x68] sm:$0xf] %v795_v11  ;;  %v356_v43 = vsel %vm195_vm0, %v350_v33, %v1537_v1  ;;  %v335_v45 = vpack.c.bf16 0.0, %v333_v42  ;;  %v517_v46 = vsel %vm195_vm0, %v511_v37, %v1537_v1  ;;  %v540_v47 = vsel %vm195_vm0, %v534_v38, %v1537_v1 }
  0x29   : > { %821 = vst [vmem:[#allocation7 + $0x6c] sm:$0xf] %v818_v14  ;;  %1462 = vmatmul.msk.bf16.vlgmr.msra.gmra.mxu3 %vm1047_vm1, %v1480_v23  ;;  %v902_v48 = vunpack.c.h.bf16 %v1376_v36  ;;  %v358_v49 = vpack.c.bf16 0.0, %v356_v43  ;;  %v701_v50 = vsel %vm195_vm0, %v695_v39, %v1537_v1  ;;  %v519_v52 = vpack.c.bf16 0.0, %v517_v46 }
  0x2a   : > { %292 = vst [vmem:[#allocation7 + $0x10] sm:$0xf] %v289_v17  ;;  %v1469_v51 = vld [vmem:[#allocation7 + $0x8] sm:$0xff]  ;;  %v724_v53 = vsel %vm195_vm0, %v718_v40, %v1537_v1  ;;  %v542_v54 = vpack.c.bf16 0.0, %v540_v47  ;;  %v885_v55 = vsel %vm195_vm0, %v879_v44, %v1537_v1  ;;  %v703_v57 = vpack.c.bf16 0.0, %v701_v50 }
  0x2b   : > { %315 = vst [vmem:[#allocation7 + $0x14] sm:$0xf] %v312_v20  ;;  %v908_v58 = vsel %vm195_vm0, %v902_v48, %v1537_v1  ;;  %v726_v59 = vpack.c.bf16 0.0, %v724_v53  ;;  %v887_v61 = vpack.c.bf16 0.0, %v885_v55 }
  0x2c   : > { %476 = vst [vmem:[#allocation7 + $0x30] sm:$0xf] %v473_v24  ;;  %v1473_v56 = vld [vmem:[#allocation7 + $0x28] sm:$0xff]  ;;  %v910_v62 = vpack.c.bf16 0.0, %v908_v58 }
  0x2d   : > { %499 = vst [vmem:[#allocation7 + $0x34] sm:$0xf] %v496_v26 }
  0x2e   : > { %660 = vst [vmem:[#allocation7 + $0x50] sm:$0xf] %v657_v27  ;;  %v1477_v60 = vld [vmem:[#allocation7 + $0x48] sm:$0xff] }
  0x2f   : > { %683 = vst [vmem:[#allocation7 + $0x54] sm:$0xf] %v680_v28 }
  0x30   : > { %844 = vst [vmem:[#allocation7 + $0x70] sm:$0xf] %v841_v31  ;;  %v1481_v63 = vld [vmem:[#allocation7 + $0x68] sm:$0xff] }
  0x31   : > { %867 = vst [vmem:[#allocation7 + $0x74] sm:$0xf] %v864_v41 }
  0x32   : > { %338 = vst [vmem:[#allocation7 + $0x18] sm:$0xf] %v335_v45  ;;  %v1470_v5 = vld [vmem:[#allocation7 + $0x10] sm:$0xff] }
  0x33   : > { %361 = vst [vmem:[#allocation7 + $0x1c] sm:$0xf] %v358_v49  ;;  %1451 = vmatmul.msk.bf16.gmra.mxu0 %vm1047_vm1, %v1469_v51 }
  0x34   : > { %522 = vst [vmem:[#allocation7 + $0x38] sm:$0xf] %v519_v52  ;;  %v1474_v0 = vld [vmem:[#allocation7 + $0x30] sm:$0xff] }
  0x35   : > { %545 = vst [vmem:[#allocation7 + $0x3c] sm:$0xf] %v542_v54  ;;  %1455 = vmatmul.msk.bf16.gmra.mxu1 %vm1047_vm1, %v1473_v56 }
  0x36   : > { %706 = vst [vmem:[#allocation7 + $0x58] sm:$0xf] %v703_v57  ;;  %v1478_v2 = vld [vmem:[#allocation7 + $0x50] sm:$0xff] }
  0x37   : > { %729 = vst [vmem:[#allocation7 + $0x5c] sm:$0xf] %v726_v59  ;;  %1459 = vmatmul.msk.bf16.gmra.mxu2 %vm1047_vm1, %v1477_v60 }
  0x38   : > { %890 = vst [vmem:[#allocation7 + $0x78] sm:$0xf] %v887_v61  ;;  %v1482_v3 = vld [vmem:[#allocation7 + $0x70] sm:$0xff] }
  0x39   : > { %913 = vst [vmem:[#allocation7 + $0x7c] sm:$0xf] %v910_v62  ;;  %1463 = vmatmul.msk.bf16.gmra.mxu3 %vm1047_vm1, %v1481_v63 }
  0x3a   : > { %v1471_v4 = vld [vmem:[#allocation7 + $0x18] sm:$0xff] }
  0x3c   : > { %v1475_v6 = vld [vmem:[#allocation7 + $0x38] sm:$0xff] }
  0x3e   : > { %v1479_v7 = vld [vmem:[#allocation7 + $0x58] sm:$0xff] }
  0x40   : > { %v1483_v8 = vld [vmem:[#allocation7 + $0x78] sm:$0xff] }
  0x43   : > { %1452 = vmatmul.msk.bf16.gmra.mxu0 %vm1047_vm1, %v1470_v5 }
  0x45   : > { %1456 = vmatmul.msk.bf16.gmra.mxu1 %vm1047_vm1, %v1474_v0 }
  0x47   : > { %1460 = vmatmul.msk.bf16.gmra.mxu2 %vm1047_vm1, %v1478_v2 }
  0x49   : > { %1464 = vmatmul.msk.bf16.gmra.mxu3 %vm1047_vm1, %v1482_v3 }
  0x53   : > { %1453 = vmatmul.msk.bf16.gmra.mxu0 %vm1047_vm1, %v1471_v4 }
  0x55   : > { %1457 = vmatmul.msk.bf16.gmra.mxu1 %vm1047_vm1, %v1475_v6 }
  0x57   : > { %1461 = vmatmul.msk.bf16.gmra.mxu2 %vm1047_vm1, %v1479_v7 }
  0x59   : > { %1465 = vmatmul.msk.bf16.gmra.mxu3 %vm1047_vm1, %v1483_v8 }
  0xa0   : > { %v1105_v10 = vpop.f32.mrf.mxu0 }
  0xa1   : > { %v1106_v11 = vadd.f32 %v1697_v9, %v1105_v10 }
  0xa2   : > { %v1125_v12 = vpop.f32.mrf.mxu1 }
  0xa3   : > { %v1185_v13 = vmax.f32 %v1106_v11, 0.0  ;;  %v1126_v14 = vadd.f32 %v1697_v9, %v1125_v12 }
  0xa5   : > { %v1217_v15 = vpack.c.bf16 %v1185_v13, %v1185_v13  ;;  %v1193_v16 = vmax.f32 %v1126_v14, 0.0 }
  0xa7   : > { %1250 = vst.msk [vmem:[%s1706_s5] sm:$0xf] %vm1249_vm2, %v1217_v15  ;;  %v1225_v17 = vpack.c.bf16 %v1193_v16, %v1193_v16 }
  0xa8   : > { %v1107_v18 = vpop.f32.mrf.mxu0 }
  0xa9   : > { %1258 = vst.msk [vmem:[%s1706_s5 + $0x20] sm:$0xf] %vm1249_vm2, %v1225_v17  ;;  %v1108_v19 = vadd.f32 %v1697_v9, %v1107_v18 }
  0xaa   : > { %v1145_v20 = vpop.f32.mrf.mxu2  ;;  %v1127_v21 = vpop.f32.mrf.mxu1 }
  0xab   : > { %v1146_v22 = vadd.f32 %v1697_v9, %v1145_v20  ;;  %v1186_v23 = vmax.f32 %v1108_v19, 0.0  ;;  %v1128_v24 = vadd.f32 %v1697_v9, %v1127_v21 }
  0xac   : > { %v1165_v25 = vpop.f32.mrf.mxu3 }
  0xad   : > { %v1201_v26 = vmax.f32 %v1146_v22, 0.0  ;;  %v1166_v27 = vadd.f32 %v1697_v9, %v1165_v25  ;;  %v1218_v28 = vpack.c.bf16 %v1186_v23, %v1186_v23  ;;  %v1194_v29 = vmax.f32 %v1128_v24, 0.0 }
  0xaf   : > { %v1233_v30 = vpack.c.bf16 %v1201_v26, %v1201_v26  ;;  %v1209_v31 = vmax.f32 %v1166_v27, 0.0  ;;  %1251 = vst.msk [vmem:[%s1706_s5 + $0x4] sm:$0xf] %vm1249_vm2, %v1218_v28  ;;  %v1226_v32 = vpack.c.bf16 %v1194_v29, %v1194_v29 }
  0xb0   : > { %v1110_v33 = vpop.f32.mrf.mxu0 }
  0xb1   : > { %1266 = vst.msk [vmem:[%s1706_s5 + $0x40] sm:$0xf] %vm1249_vm2, %v1233_v30  ;;  %v1241_v34 = vpack.c.bf16 %v1209_v31, %v1209_v31  ;;  %v1111_v35 = vadd.f32 %v1697_v9, %v1110_v33 }
  0xb2   : > { %1259 = vst.msk [vmem:[%s1706_s5 + $0x24] sm:$0xf] %vm1249_vm2, %v1226_v32  ;;  %v1147_v36 = vpop.f32.mrf.mxu2  ;;  %v1130_v37 = vpop.f32.mrf.mxu1 }
  0xb3   : > { %1274 = vst.msk [vmem:[%s1706_s5 + $0x60] sm:$0xf] %vm1249_vm2, %v1241_v34  ;;  %v1148_v38 = vadd.f32 %v1697_v9, %v1147_v36  ;;  %v1187_v39 = vmax.f32 %v1111_v35, 0.0  ;;  %v1131_v40 = vadd.f32 %v1697_v9, %v1130_v37 }
  0xb4   : > { %v1167_v41 = vpop.f32.mrf.mxu3 }
  0xb5   : > { %v1202_v42 = vmax.f32 %v1148_v38, 0.0  ;;  %v1168_v43 = vadd.f32 %v1697_v9, %v1167_v41  ;;  %v1219_v44 = vpack.c.bf16 %v1187_v39, %v1187_v39  ;;  %v1195_v45 = vmax.f32 %v1131_v40, 0.0 }
  0xb7   : > { %v1234_v46 = vpack.c.bf16 %v1202_v42, %v1202_v42  ;;  %v1210_v47 = vmax.f32 %v1168_v43, 0.0  ;;  %1252 = vst.msk [vmem:[%s1706_s5 + $0x8] sm:$0xf] %vm1249_vm2, %v1219_v44  ;;  %v1227_v48 = vpack.c.bf16 %v1195_v45, %v1195_v45 }
  0xb8   : > { %v1112_v49 = vpop.f32.mrf.mxu0 }
  0xb9   : > { %1267 = vst.msk [vmem:[%s1706_s5 + $0x44] sm:$0xf] %vm1249_vm2, %v1234_v46  ;;  %v1242_v50 = vpack.c.bf16 %v1210_v47, %v1210_v47  ;;  %v1113_v51 = vadd.f32 %v1697_v9, %v1112_v49 }
  0xba   : > { %1260 = vst.msk [vmem:[%s1706_s5 + $0x28] sm:$0xf] %vm1249_vm2, %v1227_v48  ;;  %v1150_v52 = vpop.f32.mrf.mxu2  ;;  %v1132_v53 = vpop.f32.mrf.mxu1 }
  0xbb   : > { %1275 = vst.msk [vmem:[%s1706_s5 + $0x64] sm:$0xf] %vm1249_vm2, %v1242_v50  ;;  %v1151_v54 = vadd.f32 %v1697_v9, %v1150_v52  ;;  %v1188_v55 = vmax.f32 %v1113_v51, 0.0  ;;  %v1133_v56 = vadd.f32 %v1697_v9, %v1132_v53 }
  0xbc   : > { %v1170_v57 = vpop.f32.mrf.mxu3 }
  0xbd   : > { %v1203_v58 = vmax.f32 %v1151_v54, 0.0  ;;  %v1171_v59 = vadd.f32 %v1697_v9, %v1170_v57  ;;  %v1220_v60 = vpack.c.bf16 %v1188_v55, %v1188_v55  ;;  %v1196_v61 = vmax.f32 %v1133_v56, 0.0 }
  0xbf   : > { %v1235_v62 = vpack.c.bf16 %v1203_v58, %v1203_v58  ;;  %v1211_v63 = vmax.f32 %v1171_v59, 0.0  ;;  %1253 = vst.msk [vmem:[%s1706_s5 + $0xc] sm:$0xf] %vm1249_vm2, %v1220_v60  ;;  %v1228_v5 = vpack.c.bf16 %v1196_v61, %v1196_v61 }
  0xc0   : > { %v1115_v0 = vpop.f32.mrf.mxu0 }
  0xc1   : > { %1268 = vst.msk [vmem:[%s1706_s5 + $0x48] sm:$0xf] %vm1249_vm2, %v1235_v62  ;;  %v1243_v2 = vpack.c.bf16 %v1211_v63, %v1211_v63  ;;  %v1116_v3 = vadd.f32 %v1697_v9, %v1115_v0 }
  0xc2   : > { %1261 = vst.msk [vmem:[%s1706_s5 + $0x2c] sm:$0xf] %vm1249_vm2, %v1228_v5  ;;  %v1152_v4 = vpop.f32.mrf.mxu2  ;;  %v1135_v6 = vpop.f32.mrf.mxu1 }
  0xc3   : > { %1276 = vst.msk [vmem:[%s1706_s5 + $0x68] sm:$0xf] %vm1249_vm2, %v1243_v2  ;;  %v1153_v7 = vadd.f32 %v1697_v9, %v1152_v4  ;;  %v1189_v8 = vmax.f32 %v1116_v3, 0.0  ;;  %v1136_v10 = vadd.f32 %v1697_v9, %v1135_v6 }
  0xc4   : > { %v1172_v11 = vpop.f32.mrf.mxu3 }
  0xc5   : > { %v1204_v12 = vmax.f32 %v1153_v7, 0.0  ;;  %v1173_v13 = vadd.f32 %v1697_v9, %v1172_v11  ;;  %v1221_v14 = vpack.c.bf16 %v1189_v8, %v1189_v8  ;;  %v1197_v15 = vmax.f32 %v1136_v10, 0.0 }
  0xc7   : > { %v1236_v16 = vpack.c.bf16 %v1204_v12, %v1204_v12  ;;  %v1212_v17 = vmax.f32 %v1173_v13, 0.0  ;;  %1254 = vst.msk [vmem:[%s1706_s5 + $0x10] sm:$0xf] %vm1249_vm2, %v1221_v14  ;;  %v1229_v18 = vpack.c.bf16 %v1197_v15, %v1197_v15 }
  0xc8   : > { %v1117_v19 = vpop.f32.mrf.mxu0 }
  0xc9   : > { %1269 = vst.msk [vmem:[%s1706_s5 + $0x4c] sm:$0xf] %vm1249_vm2, %v1236_v16  ;;  %v1244_v20 = vpack.c.bf16 %v1212_v17, %v1212_v17  ;;  %v1118_v21 = vadd.f32 %v1697_v9, %v1117_v19 }
  0xca   : > { %1262 = vst.msk [vmem:[%s1706_s5 + $0x30] sm:$0xf] %vm1249_vm2, %v1229_v18  ;;  %v1155_v22 = vpop.f32.mrf.mxu2  ;;  %v1137_v23 = vpop.f32.mrf.mxu1 }
  0xcb   : > { %1277 = vst.msk [vmem:[%s1706_s5 + $0x6c] sm:$0xf] %vm1249_vm2, %v1244_v20  ;;  %v1156_v24 = vadd.f32 %v1697_v9, %v1155_v22  ;;  %v1190_v25 = vmax.f32 %v1118_v21, 0.0  ;;  %v1138_v26 = vadd.f32 %v1697_v9, %v1137_v23 }
  0xcc   : > { %v1175_v27 = vpop.f32.mrf.mxu3 }
  0xcd   : > { %v1205_v28 = vmax.f32 %v1156_v24, 0.0  ;;  %v1176_v29 = vadd.f32 %v1697_v9, %v1175_v27  ;;  %v1222_v30 = vpack.c.bf16 %v1190_v25, %v1190_v25  ;;  %v1198_v31 = vmax.f32 %v1138_v26, 0.0 }
  0xcf   : > { %v1237_v32 = vpack.c.bf16 %v1205_v28, %v1205_v28  ;;  %v1213_v33 = vmax.f32 %v1176_v29, 0.0  ;;  %1255 = vst.msk [vmem:[%s1706_s5 + $0x14] sm:$0xf] %vm1249_vm2, %v1222_v30  ;;  %v1230_v34 = vpack.c.bf16 %v1198_v31, %v1198_v31 }
  0xd0   : > { %v1120_v35 = vpop.f32.mrf.mxu0 }
  0xd1   : > { %1270 = vst.msk [vmem:[%s1706_s5 + $0x50] sm:$0xf] %vm1249_vm2, %v1237_v32  ;;  %v1245_v36 = vpack.c.bf16 %v1213_v33, %v1213_v33  ;;  %v1121_v37 = vadd.f32 %v1697_v9, %v1120_v35 }
  0xd2   : > { %1263 = vst.msk [vmem:[%s1706_s5 + $0x34] sm:$0xf] %vm1249_vm2, %v1230_v34  ;;  %v1157_v38 = vpop.f32.mrf.mxu2  ;;  %v1140_v39 = vpop.f32.mrf.mxu1 }
  0xd3   : > { %1278 = vst.msk [vmem:[%s1706_s5 + $0x70] sm:$0xf] %vm1249_vm2, %v1245_v36  ;;  %v1158_v40 = vadd.f32 %v1697_v9, %v1157_v38  ;;  %v1191_v41 = vmax.f32 %v1121_v37, 0.0  ;;  %v1141_v42 = vadd.f32 %v1697_v9, %v1140_v39 }
  0xd4   : > { %v1177_v43 = vpop.f32.mrf.mxu3 }
  0xd5   : > { %v1206_v44 = vmax.f32 %v1158_v40, 0.0  ;;  %v1178_v45 = vadd.f32 %v1697_v9, %v1177_v43  ;;  %v1223_v46 = vpack.c.bf16 %v1191_v41, %v1191_v41  ;;  %v1199_v47 = vmax.f32 %v1141_v42, 0.0 }
  0xd7   : > { %v1238_v48 = vpack.c.bf16 %v1206_v44, %v1206_v44  ;;  %v1214_v49 = vmax.f32 %v1178_v45, 0.0  ;;  %1256 = vst.msk [vmem:[%s1706_s5 + $0x18] sm:$0xf] %vm1249_vm2, %v1223_v46  ;;  %v1231_v50 = vpack.c.bf16 %v1199_v47, %v1199_v47 }
  0xd8   : > { %v1122_v51 = vpop.f32.mrf.mxu0 }
  0xd9   : > { %1271 = vst.msk [vmem:[%s1706_s5 + $0x54] sm:$0xf] %vm1249_vm2, %v1238_v48  ;;  %v1246_v52 = vpack.c.bf16 %v1214_v49, %v1214_v49  ;;  %v1123_v53 = vadd.f32 %v1697_v9, %v1122_v51 }
  0xda   : > { %1264 = vst.msk [vmem:[%s1706_s5 + $0x38] sm:$0xf] %vm1249_vm2, %v1231_v50  ;;  %v1160_v54 = vpop.f32.mrf.mxu2  ;;  %v1142_v55 = vpop.f32.mrf.mxu1 }
  0xdb   : > { %1279 = vst.msk [vmem:[%s1706_s5 + $0x74] sm:$0xf] %vm1249_vm2, %v1246_v52  ;;  %v1161_v56 = vadd.f32 %v1697_v9, %v1160_v54  ;;  %v1192_v57 = vmax.f32 %v1123_v53, 0.0  ;;  %v1143_v58 = vadd.f32 %v1697_v9, %v1142_v55 }
  0xdc   : > { %v1180_v59 = vpop.f32.mrf.mxu3 }
  0xdd   : > { %v1207_v60 = vmax.f32 %v1161_v56, 0.0  ;;  %v1181_v61 = vadd.f32 %v1697_v9, %v1180_v59  ;;  %v1224_v62 = vpack.c.bf16 %v1192_v57, %v1192_v57  ;;  %v1200_v63 = vmax.f32 %v1143_v58, 0.0 }
  0xdf   : > { %v1239_v5 = vpack.c.bf16 %v1207_v60, %v1207_v60  ;;  %v1215_v0 = vmax.f32 %v1181_v61, 0.0  ;;  %1257 = vst.msk [vmem:[%s1706_s5 + $0x1c] sm:$0xf] %vm1249_vm2, %v1224_v62  ;;  %v1232_v2 = vpack.c.bf16 %v1200_v63, %v1200_v63 }
  0xe1   : > { %1272 = vst.msk [vmem:[%s1706_s5 + $0x58] sm:$0xf] %vm1249_vm2, %v1239_v5  ;;  %v1247_v3 = vpack.c.bf16 %v1215_v0, %v1215_v0 }
  0xe2   : > { %1265 = vst.msk [vmem:[%s1706_s5 + $0x3c] sm:$0xf] %vm1249_vm2, %v1232_v2  ;;  %v1162_v4 = vpop.f32.mrf.mxu2 }
  0xe3   : > { %1280 = vst.msk [vmem:[%s1706_s5 + $0x78] sm:$0xf] %vm1249_vm2, %v1247_v3  ;;  %v1163_v6 = vadd.f32 %v1697_v9, %v1162_v4 }
  0xe4   : > { %v1182_v7 = vpop.f32.mrf.mxu3 }
  0xe5   : > { %v1208_v8 = vmax.f32 %v1163_v6, 0.0  ;;  %v1183_v10 = vadd.f32 %v1697_v9, %v1182_v7 }
  0xe7   : > { %v1240_v11 = vpack.c.bf16 %v1208_v8, %v1208_v8  ;;  %v1216_v12 = vmax.f32 %v1183_v10, 0.0 }
  0xe9   : > { %1273 = vst.msk [vmem:[%s1706_s5 + $0x5c] sm:$0xf] %vm1249_vm2, %v1240_v11  ;;  %v1248_v13 = vpack.c.bf16 %v1216_v12, %v1216_v12 }
  0xeb   : > { %1281 = vst.msk [vmem:[%s1706_s5 + $0x7c] sm:$0xf] %vm1249_vm2, %v1248_v13 }
  0xec PF: > { %s19_s17 = sadd.s32 1, %s1507_s17  }
  0xed   : > { %p16_p4 = scmp.ge.s32.totalorder %s19_s17, 4  }
  0xef   :  { %18 = sbr.rel (!%p16_p4) target bundleno = 3 (0x3), region = 124 }

// kernel: video_feature_extractor.5
= control target key start
LH: loop header
LB: loop body
LE: loop exit
PB: predicated region body
PF: predicated region fallthrough
CT: control target
= control target key end

     0   :  { %s897_s12 = smov 0   ;;  %s1041_s0 = inlined_call_operand.vmem [shape: bf16[32,576], index: 0, kind: input, shape index: {}]   ;;  %s1042_s1 = inlined_call_operand.vmem [shape: bf16[576,128], index: 1, kind: input, shape index: {}]   ;;  %s1043_s2 = inlined_call_operand.vmem [shape: f32[1,128], index: 2, kind: input, shape index: {}]   ;;  %s1044_s3 = inlined_call_operand.vmem [shape: bf16[32,128], index: 3, kind: output, shape index: {}]  }
   0x1 LB: > { %s637_s13 = sadd.s32 4294967295, %s875_s12   ;;  %p641_p0 = scmp.ge.s32.totalorder %s875_s12, 1  ;;  %s875_s12 = sphi %s897_s12, %s13_s12  }
   0x2   : > { %p139_p1 = scmp.lt.s32.totalorder %s875_s12, 3 }
   0x4   : > { %p140_p2 = pnand %p641_p0, %p139_p1 }
   0x5   : > { %s642_s11 = sshll.u32 (!%p140_p2), %s637_s13, 1 }
   0x6   : > { %143 = sbr.rel (%p140_p2) target bundleno = 200 (0xc8), region = 32  ;;  %p165_p3 = scmp.lt.s32.totalorder (!%p140_p2), %s642_s11, 3 }
   0xb   : > { %v825_v0 = vld [vmem:[%s1042_s1 + $0x38] sm:$0xff]  ;;  %v824_v4 = vld [vmem:[%s1042_s1 + $0x30] sm:$0xff]  ;;  %v823_v8 = vld [vmem:[%s1042_s1 + $0x28] sm:$0xff]  ;;  %s1046_s11 = smov (!%p165_p3, %s642_s11), 3  ;;  %vm501_vm0 = vcmask 523264  }
   0xc   : > { %v841_v1 = vld [vmem:[%s1042_s1 + $0xb8] sm:$0xff]  ;;  %505 = vmatpush.bf16.msra.mxu0 %v825_v0  ;;  %v840_v5 = vld [vmem:[%s1042_s1 + $0xb0] sm:$0xff]  ;;  %v839_v9 = vld [vmem:[%s1042_s1 + $0xa8] sm:$0xff]  ;;  %s859_s6 = smul.u32 20, %s1046_s11  ;;  %s645_s18 = sshll.u32 %s1046_s11, 2 }
   0xd   : > { %v849_v2 = vld [vmem:[%s1042_s1 + $0xf8] sm:$0xff]  ;;  %533 = vmatpush.bf16.msra.mxu2 %v841_v1  ;;  %v848_v6 = vld [vmem:[%s1042_s1 + $0xf0] sm:$0xff]  ;;  %v847_v10 = vld [vmem:[%s1042_s1 + $0xe8] sm:$0xff]  ;;  %s175_s21 = scalar_lea.vmem %s1044_s3, %s645_s18 }
   0xe   : > { %v833_v3 = vld [vmem:[%s1042_s1 + $0x78] sm:$0xff]  ;;  %547 = vmatpush.bf16.msra.mxu3 %v849_v2  ;;  %v832_v7 = vld [vmem:[%s1042_s1 + $0x70] sm:$0xff]  ;;  %v831_v11 = vld [vmem:[%s1042_s1 + $0x68] sm:$0xff]  ;;  %s989_s20 = scalar_lea.vmem %s1041_s0, %s859_s6 }
   0xf   : > { %519 = vmatpush.bf16.msra.mxu1 %v833_v3  ;;  %v822_v12 = vld [vmem:[%s1042_s1 + $0x20] sm:$0xff]  ;;  %v821_v16 = vld [vmem:[%s1042_s1 + $0x18] sm:$0xff]  ;;  %v820_v20 = vld [vmem:[%s1042_s1 + $0x10] sm:$0xff] }
  0x10   : > { %506 = vmatpush.bf16.msra.mxu0 %v824_v4  ;;  %v838_v13 = vld [vmem:[%s1042_s1 + $0xa0] sm:$0xff]  ;;  %v837_v17 = vld [vmem:[%s1042_s1 + $0x98] sm:$0xff]  ;;  %v836_v21 = vld [vmem:[%s1042_s1 + $0x90] sm:$0xff] }
  0x11   : > { %534 = vmatpush.bf16.msra.mxu2 %v840_v5  ;;  %v846_v14 = vld [vmem:[%s1042_s1 + $0xe0] sm:$0xff]  ;;  %v845_v18 = vld [vmem:[%s1042_s1 + $0xd8] sm:$0xff]  ;;  %v844_v22 = vld [vmem:[%s1042_s1 + $0xd0] sm:$0xff] }
  0x12   : > { %548 = vmatpush.bf16.msra.mxu3 %v848_v6  ;;  %v830_v15 = vld [vmem:[%s1042_s1 + $0x60] sm:$0xff]  ;;  %v829_v19 = vld [vmem:[%s1042_s1 + $0x58] sm:$0xff]  ;;  %v828_v23 = vld [vmem:[%s1042_s1 + $0x50] sm:$0xff] }
  0x13   : > { %520 = vmatpush.bf16.msra.mxu1 %v832_v7  ;;  %v819_v24 = vld [vmem:[%s1042_s1 + $0x8] sm:$0xff]  ;;  %v818_v28 = vld [vmem:[%s1042_s1] sm:$0xff]  ;;  %v815_v33 = vld [vmem:[%s989_s20 + $0x10] sm:$0xf0] }
  0x14   : > { %507 = vmatpush.bf16.msra.mxu0 %v823_v8  ;;  %v835_v25 = vld [vmem:[%s1042_s1 + $0x88] sm:$0xff]  ;;  %v834_v29 = vld [vmem:[%s1042_s1 + $0x80] sm:$0xff]  ;;  %v816_v35 = vld [vmem:[%s989_s20 + $0x18] sm:$0xf0] }
  0x15   : > { %535 = vmatpush.bf16.msra.mxu2 %v839_v9  ;;  %v843_v26 = vld [vmem:[%s1042_s1 + $0xc8] sm:$0xff]  ;;  %v842_v30 = vld [vmem:[%s1042_s1 + $0xc0] sm:$0xff]  ;;  %v650_v39 = vld [vmem:[%s989_s20 + $0x14] sm:$0xf0] }
  0x16   : > { %549 = vmatpush.bf16.msra.mxu3 %v847_v10  ;;  %v827_v27 = vld [vmem:[%s1042_s1 + $0x48] sm:$0xff]  ;;  %v826_v31 = vld [vmem:[%s1042_s1 + $0x40] sm:$0xff]  ;;  %v853_v40 = vld [vmem:[%s1042_s1 + $0x118] sm:$0xff] }
  0x17   : > { %521 = vmatpush.bf16.msra.mxu1 %v831_v11  ;;  %v648_v32 = vld [vmem:[%s989_s20] sm:$0xf]  ;;  %v656_v34 = vld [vmem:[%s989_s20 + $0x8] sm:$0xf]  ;;  %v814_v36 = vld [vmem:[%s989_s20 + $0xc] sm:$0xf] }
  0x18   : > { %508 = vmatpush.bf16.msra.mxu0 %v822_v12  ;;  %v658_v37 = vld [vmem:[%s989_s20 + $0x1c] sm:$0xf0]  ;;  %v813_v38 = vld [vmem:[%s989_s20 + $0x4] sm:$0xf]  ;;  %v649_v41 = vor.u32 %v815_v33, %v648_v32  ;;  %v657_v42 = vor.u32 %v816_v35, %v656_v34  ;;  %v852_v45 = vld [vmem:[%s1042_s1 + $0x110] sm:$0xff] }
  0x19   : > { %536 = vmatpush.bf16.msra.mxu2 %v838_v13  ;;  %v661_v43 = vor.u32 %v814_v36, %v658_v37  ;;  %v653_v44 = vor.u32 %v813_v38, %v650_v39  ;;  %v851_v46 = vld [vmem:[%s1042_s1 + $0x108] sm:$0xff]  ;;  %v850_v47 = vld [vmem:[%s1042_s1 + $0x100] sm:$0xff]  ;;  %v664_v48 = vld [vmem:[%s989_s20 + $0x10] sm:$0xf] }
  0x1a   : > { %550 = vmatpush.bf16.msra.mxu3 %v846_v14  ;;  %v817_v49 = vld [vmem:[%s989_s20 + $0x20] sm:$0xf0]  ;;  %v868_v54 = vld [vmem:[%s1043_s2] ss:$0 sm:$0xff] }
  0x1b   : > { %522 = vmatpush.bf16.msra.mxu1 %v830_v15  ;;  %v665_v50 = vor.u32 %v817_v49, %v664_v48 }
  0x1c   : > { %509 = vmatpush.bf16.msra.mxu0 %v821_v16 }
  0x1d   : > { %537 = vmatpush.bf16.msra.mxu2 %v837_v17 }
  0x1e   : > { %551 = vmatpush.bf16.msra.mxu3 %v845_v18 }
  0x1f   : > { %523 = vmatpush.bf16.msra.mxu1 %v829_v19 }
  0x20   : > { %510 = vmatpush.bf16.msra.mxu0 %v820_v20 }
  0x21   : > { %538 = vmatpush.bf16.msra.mxu2 %v836_v21 }
  0x22   : > { %552 = vmatpush.bf16.msra.mxu3 %v844_v22 }
  0x23   : > { %524 = vmatpush.bf16.msra.mxu1 %v828_v23 }
  0x24   : > { %511 = vmatpush.bf16.msra.mxu0 %v819_v24 }
  0x25   : > { %539 = vmatpush.bf16.msra.mxu2 %v835_v25 }
  0x26   : > { %553 = vmatpush.bf16.msra.mxu3 %v843_v26 }
  0x27   : > { %525 = vmatpush.bf16.msra.mxu1 %v827_v27 }
  0x28   : > { %512 = vmatpush.bf16.msra.mxu0 %v818_v28 }
  0x29   : > { %540 = vmatpush.bf16.msra.mxu2 %v834_v29 }
  0x2a   : > { %554 = vmatpush.bf16.msra.mxu3 %v842_v30 }
  0x2b   : > { %526 = vmatpush.bf16.msra.mxu1 %v826_v31  ;;  %513 = vmatmul.bf16.vlgmr.msra.gmra.mxu0 %v649_v41 }
  0x2c   : > { %565 = vmatpush.bf16.msrb.mxu0 %v853_v40  ;;  %541 = vmatmul.bf16.vlgmr.msra.gmra.mxu2 %v657_v42 }
  0x2d   : > { %555 = vmatmul.bf16.vlgmr.msra.gmra.mxu3 %v661_v43 }
  0x2e   : > { %527 = vmatmul.bf16.vlgmr.msra.gmra.mxu1 %v653_v44 }
  0x30   : > { %566 = vmatpush.bf16.msrb.mxu0 %v852_v45 }
  0x34   : > { %567 = vmatpush.bf16.msrb.mxu0 %v851_v46 }
  0x38   : > { %568 = vmatpush.bf16.msrb.mxu0 %v850_v47 }
  0x3b   : > { %810 = vmatmul.msk.bf16.vlgmr.msrb.gmra.mxu0 %vm501_vm0, %v665_v50 }
  0xa8   : > { %v514_v51 = vpop.f32.mrf.mxu0 }
  0xa9   : > { %v515_v56 = vadd.f32 %v868_v54, %v514_v51 }
  0xab   : > { %v528_v52 = vpop.f32.mrf.mxu1 }
  0xac   : > { %v529_v60 = vadd.f32 %v528_v52, %v515_v56 }
  0xaf   : > { %v542_v53 = vpop.f32.mrf.mxu2 }
  0xb0   : > { %v516_v55 = vpop.f32.mrf.mxu0  ;;  %v556_v57 = vpop.f32.mrf.mxu3  ;;  %v543_v63 = vadd.f32 %v542_v53, %v529_v60 }
  0xb1   : > { %v517_v58 = vadd.f32 %v868_v54, %v516_v55 }
  0xb2   : > { %v557_v2 = vadd.f32 %v556_v57, %v543_v63 }
  0xb3   : > { %v530_v59 = vpop.f32.mrf.mxu1 }
  0xb4   : > { %v531_v0 = vadd.f32 %v530_v59, %v517_v58 }
  0xb7   : > { %v544_v61 = vpop.f32.mrf.mxu2 }
  0xb8   : > { %v570_v62 = vpop.f32.mrf.mxu0  ;;  %v545_v1 = vadd.f32 %v544_v61, %v531_v0  ;;  %v558_v3 = vpop.f32.mrf.mxu3 }
  0xb9   : > { %v571_v5 = vadd.f32 %v570_v62, %v557_v2 }
  0xba   : > { %v559_v4 = vadd.f32 %v558_v3, %v545_v1 }
  0xbb   : > { %v575_v8 = vmax.f32 %v571_v5, 0.0 }
  0xc0   : > { %v572_v6 = vpop.f32.mrf.mxu0 }
  0xc1   : > { %v573_v7 = vadd.f32 %v572_v6, %v559_v4 }
  0xc3   : > { %v576_v9 = vmax.f32 %v573_v7, 0.0 }
  0xc5   : > { %v857_v10 = vpack.c.bf16 %v576_v9, %v575_v8 }
  0xc7   : > { %858 = vst [vmem:[%s175_s21] sm:$0xff] %v857_v10  }
  0xc8 PF: > { %s13_s12 = sadd.s32 1, %s875_s12  }
  0xc9   : > { %p10_p4 = scmp.ge.s32.totalorder %s13_s12, 4  }
  0xcb   :  { %12 = sbr.rel (!%p10_p4) target bundleno = 1 (0x1), region = 62 }

// kernel: video_feature_extractor.7
= control target key start
LH: loop header
LB: loop body
LE: loop exit
PB: predicated region body
PF: predicated region fallthrough
CT: control target
= control target key end

     0   :  { %vm164_vm0 = vcmask 1041409   ;;  %vm167_vm1 = vcmask 1042434   ;;  %vm170_vm2 = vcmask 1043459   ;;  %vm173_vm3 = vcmask 1044484   ;;  %s584_s0 = inlined_call_operand.vmem [shape: bf16[8,1,256], index: 0, kind: input, shape index: {}]   ;;  %s585_s1 = inlined_call_operand.vmem [shape: bf16[256,32], index: 1, kind: input, shape index: {}]   ;;  %s586_s2 = inlined_call_operand.vmem [shape: f32[1,32], index: 2, kind: input, shape index: {}]   ;;  %s587_s3 = inlined_call_operand.hbm [shape: f32[8,32], index: 3, kind: output, shape index: {}]  }
   0x1   :  { %v413_v0 = vld [vmem:[%s585_s1 + $0x38] sm:$0xff]  ;;  %v412_v2 = vld [vmem:[%s585_s1 + $0x30] sm:$0xff]  ;;  %v411_v4 = vld [vmem:[%s585_s1 + $0x28] sm:$0xff] }
   0x2   :  { %v421_v1 = vld [vmem:[%s585_s1 + $0x78] sm:$0xff]  ;;  %298 = vmatpush.bf16.msra.mxu0 %v413_v0  ;;  %v420_v3 = vld [vmem:[%s585_s1 + $0x70] sm:$0xff]  ;;  %v419_v5 = vld [vmem:[%s585_s1 + $0x68] sm:$0xff] }
   0x3   :  { %311 = vmatpush.bf16.msra.mxu1 %v421_v1  ;;  %v15_v6 = vld [vmem:[%s584_s0] sm:$0x3]  ;;  %v495_v7 = vld [vmem:[%s584_s0 + $0x2] sm:$0x3]  ;;  %v500_v8 = vld [vmem:[%s584_s0 + $0x4] sm:$0x3] }
   0x4   :  { %v505_v9 = vld [vmem:[%s584_s0 + $0x6] sm:$0x3]  ;;  %v510_v10 = vld [vmem:[%s584_s0 + $0x8] sm:$0x3]  ;;  %v23_v11 = vunpack.c.l.bf16 %v15_v6  ;;  %v24_v12 = vunpack.c.l.bf16 %v495_v7  ;;  %v516_v13 = vld [vmem:[%s584_s0 + $0xa] sm:$0x3]  ;;  %v25_v16 = vunpack.c.l.bf16 %v500_v8 }
   0x5   :  { %v521_v14 = vld [vmem:[%s584_s0 + $0xc] sm:$0x3]  ;;  %v526_v15 = vld [vmem:[%s584_s0 + $0xe] sm:$0x3]  ;;  %v26_v17 = vunpack.c.l.bf16 %v505_v9  ;;  %v27_v18 = vunpack.c.l.bf16 %v510_v10  ;;  %v28_v19 = vunpack.c.l.bf16 %v516_v13 }
   0x6   :  { %299 = vmatpush.bf16.msra.mxu0 %v412_v2  ;;  %v29_v20 = vunpack.c.l.bf16 %v521_v14  ;;  %v30_v21 = vunpack.c.l.bf16 %v526_v15  ;;  %v47_v22 = vperm.slane %v23_v11, 0  ;;  %v49_v23 = vperm.slane %v24_v12, 0 }
   0x7   :  { %312 = vmatpush.bf16.msra.mxu1 %v420_v3  ;;  %v51_v24 = vperm.slane %v25_v16, 0  ;;  %v53_v25 = vperm.slane %v26_v17, 0  ;;  %v55_v26 = vperm.slane %v27_v18, 0 }
   0x8   :  { %8 = vsyncpa [#allocation3], 0  ;;  %v410_v27 = vld [vmem:[%s585_s1 + $0x20] sm:$0xff]  ;;  %v57_v29 = vperm.slane %v28_v19, 0  ;;  %v59_v30 = vperm.slane %v29_v20, 0  ;;  %v61_v31 = vperm.slane %v30_v21, 0  ;;  %v79_v32 = vpack.c.bf16 %v47_v22, %v47_v22 }
   0x9   :  { %v418_v28 = vld [vmem:[%s585_s1 + $0x60] sm:$0xff]  ;;  %vm176_vm4 = vcmask 1045509   ;;  %v81_v33 = vpack.c.bf16 %v49_v23, %v49_v23  ;;  %v83_v34 = vpack.c.bf16 %v51_v24, %v51_v24  ;;  %v85_v35 = vpack.c.bf16 %v53_v25, %v53_v25  ;;  %v409_v45 = vld [vmem:[%s585_s1 + $0x18] sm:$0xff]  ;;  %v408_v62 = vld [vmem:[%s585_s1 + $0x10] sm:$0xff]  ;;  %s450_s6 = smov [#allocation2]   ;;  %s333_s10 = sshll.u32 %s587_s3, 4  ;;  %s334_s10 = int_to_ptr.hbm [resolvable:$true] %s333_s10 }
   0xa   :  { %300 = vmatpush.bf16.msra.mxu0 %v411_v4  ;;  %v87_v36 = vpack.c.bf16 %v55_v26, %v55_v26  ;;  %v89_v37 = vpack.c.bf16 %v57_v29, %v57_v29  ;;  %v91_v38 = vpack.c.bf16 %v59_v30, %v59_v30  ;;  %v93_v39 = vpack.c.bf16 %v61_v31, %v61_v31  ;;  %v417_v46 = vld [vmem:[%s585_s1 + $0x58] sm:$0xff]  ;;  %v416_v63 = vld [vmem:[%s585_s1 + $0x50] sm:$0xff]  ;;  %v406_v31 = vld [vmem:[%s585_s1] sm:$0xff]  ;;  %s331_s7 = sshll.u32 %s450_s6, 4  ;;  %s332_s7 = int_to_ptr.vmem [resolvable:$true] %s331_s7 }
   0xb   :  { %313 = vmatpush.bf16.msra.mxu1 %v419_v5  ;;  %v147_v40 = vunpack.c.l.b16 %v79_v32  ;;  %v149_v41 = vunpack.c.l.b16 %v81_v33  ;;  %v151_v42 = vunpack.c.l.b16 %v83_v34  ;;  %v153_v43 = vunpack.c.l.b16 %v85_v35  ;;  %v414_v32 = vld [vmem:[%s585_s1 + $0x40] sm:$0xff] }
   0xc   :  { %v155_v44 = vunpack.c.l.b16 %v87_v36  ;;  %v157_v47 = vunpack.c.l.b16 %v89_v37  ;;  %v159_v48 = vunpack.c.l.b16 %v91_v38  ;;  %v161_v49 = vunpack.c.l.b16 %v93_v39 }
   0xd   :  { %vm179_vm5 = vcmask 1046534   ;;  %v163_v50 = vrot.slane %v149_v41, 7  ;;  %v166_v51 = vrot.slane %v151_v42, 6  ;;  %v169_v52 = vrot.slane %v153_v43, 5 }
   0xe   :  { %301 = vmatpush.bf16.msra.mxu0 %v410_v27  ;;  %vm182_vm6 = vcmask 1047559   ;;  %v48_v53 = vperm.slane %v23_v11, 2  ;;  %v172_v54 = vrot.slane %v155_v44, 4  ;;  %v175_v55 = vrot.slane %v157_v47, 3 }
   0xf   :  { %314 = vmatpush.bf16.msra.mxu1 %v418_v28  ;;  %v178_v56 = vrot.slane %v159_v48, 2  ;;  %v50_v57 = vperm.slane %v24_v12, 2  ;;  %v165_v58 = vsel %vm164_vm0, %v163_v50, %v147_v40  ;;  %v52_v59 = vperm.slane %v25_v16, 2  ;;  %v407_v16 = vld [vmem:[%s585_s1 + $0x8] sm:$0xff] }
  0x10   :  { %v54_v60 = vperm.slane %v26_v17, 2  ;;  %v56_v61 = vperm.slane %v27_v18, 2  ;;  %v168_v0 = vsel %vm167_vm1, %v166_v51, %v165_v58  ;;  %v58_v1 = vperm.slane %v28_v19, 2  ;;  %v415_v17 = vld [vmem:[%s585_s1 + $0x48] sm:$0xff] }
  0x11   :  { %v60_v2 = vperm.slane %v29_v20, 2  ;;  %v62_v3 = vperm.slane %v30_v21, 2  ;;  %v171_v4 = vsel %vm170_vm2, %v169_v52, %v168_v0  ;;  %v80_v5 = vpack.c.bf16 %v48_v53, %v48_v53 }
  0x12   :  { %302 = vmatpush.bf16.msra.mxu0 %v409_v45  ;;  %v82_v6 = vpack.c.bf16 %v50_v57, %v50_v57  ;;  %v84_v7 = vpack.c.bf16 %v52_v59, %v52_v59  ;;  %v174_v8 = vsel %vm173_vm3, %v172_v54, %v171_v4  ;;  %v86_v9 = vpack.c.bf16 %v54_v60, %v54_v60 }
  0x13   :  { %315 = vmatpush.bf16.msra.mxu1 %v417_v46  ;;  %v88_v10 = vpack.c.bf16 %v56_v61, %v56_v61  ;;  %v90_v11 = vpack.c.bf16 %v58_v1, %v58_v1  ;;  %v177_v12 = vsel %vm176_vm4, %v175_v55, %v174_v8  ;;  %v181_v13 = vrot.slane %v161_v49, 1  ;;  %v423_v46 = vld [vmem:[%s586_s2] ss:$0 sm:$0xff] }
  0x14   :  { %v92_v14 = vpack.c.bf16 %v60_v2, %v60_v2  ;;  %v94_v15 = vpack.c.bf16 %v62_v3, %v62_v3  ;;  %v148_v18 = vunpack.c.l.b16 %v80_v5  ;;  %v150_v19 = vunpack.c.l.b16 %v82_v6 }
  0x15   :  { %v152_v20 = vunpack.c.l.b16 %v84_v7  ;;  %v154_v21 = vunpack.c.l.b16 %v86_v9  ;;  %v180_v22 = vsel %vm179_vm5, %v178_v56, %v177_v12  ;;  %v156_v23 = vunpack.c.l.b16 %v88_v10 }
  0x16   :  { %303 = vmatpush.bf16.msra.mxu0 %v408_v62  ;;  %v158_v24 = vunpack.c.l.b16 %v90_v11  ;;  %v160_v25 = vunpack.c.l.b16 %v92_v14  ;;  %v162_v26 = vunpack.c.l.b16 %v94_v15  ;;  %v184_v27 = vrot.slane %v150_v19, 7 }
  0x17   :  { %316 = vmatpush.bf16.msra.mxu1 %v416_v63  ;;  %v186_v28 = vrot.slane %v152_v20, 6  ;;  %v188_v29 = vrot.slane %v154_v21, 5  ;;  %v190_v30 = vrot.slane %v156_v23, 4  ;;  %v183_v33 = vsel %vm182_vm6, %v181_v13, %v180_v22 }
  0x18   :  { %v185_v34 = vsel %vm164_vm0, %v184_v27, %v148_v18  ;;  %v192_v35 = vrot.slane %v158_v24, 3  ;;  %v194_v37 = vrot.slane %v160_v25, 2  ;;  %v196_v39 = vrot.slane %v162_v26, 1 }
  0x19   :  { %v187_v36 = vsel %vm167_vm1, %v186_v28, %v185_v34  ;;  %v198_v40 = vpack.c.b16 %v183_v33, %v183_v33  ;;  %vm324_vm7 = vcmask 261120  }
  0x1a   :  { %304 = vmatpush.bf16.msra.mxu0 %v407_v16  ;;  %v189_v38 = vsel %vm170_vm2, %v188_v29, %v187_v36 }
  0x1b   :  { %317 = vmatpush.bf16.msra.mxu1 %v415_v17  ;;  %v191_v41 = vsel %vm173_vm3, %v190_v30, %v189_v38 }
  0x1c   :  { %v193_v42 = vsel %vm176_vm4, %v192_v35, %v191_v41 }
  0x1d   :  { %v195_v43 = vsel %vm179_vm5, %v194_v37, %v193_v42 }
  0x1e   :  { %305 = vmatpush.bf16.msra.mxu0 %v406_v31  ;;  %v197_v44 = vsel %vm182_vm6, %v196_v39, %v195_v43 }
  0x1f   :  { %318 = vmatpush.bf16.msra.mxu1 %v414_v32  ;;  %v199_v45 = vpack.c.b16 %v197_v44, %v197_v44 }
  0x21   :  { %306 = vmatmul.bf16.vlgmr.msra.gmra.mxu0 %v198_v40 }
  0x22   :  { %319 = vmatmul.bf16.vlgmr.msra.gmra.mxu1 %v199_v45 }
  0x9e   :  { %v307_v47 = vpop.f32.mrf.mxu0 }
  0x9f   :  { %v308_v48 = vadd.f32 %v423_v46, %v307_v47  ;;  %v320_v49 = vpop.f32.mrf.mxu1 }
  0xa1   :  { %v321_v50 = vadd.f32 %v320_v49, %v308_v48 }
  0xa3   :  { %325 = vst.msk [vmem:[#allocation2] sm:$0xff] %vm324_vm7, %v321_v50 }
  0xa4   :  { %336 = dma.vmem_to_hbm [thread:$0]  %s332_s7, 128, %s334_s10, [#allocation3]  }
  0xa6   :  { %v309_v51 = vpop.f32.mrf.mxu0 }
  0xa7   :  { %v322_v52 = vpop.f32.mrf.mxu1 }
  0xa8   :  { %448 = dma.done.wait [#allocation3], 128  }
  0xa9   :  { %449 = vsyncadd [#allocation3], 4294967168 }
  0xaa   :  { %341 = vsyncpa [#allocation3], 1 }

// kernel: video_feature_extractor.6
= control target key start
LH: loop header
LB: loop body
LE: loop exit
PB: predicated region body
PF: predicated region fallthrough
CT: control target
= control target key end

     0   :  { %s2824_s1 = inlined_call_operand.vmem [shape: bf16[1152,256], index: 1, kind: input, shape index: {}]   ;;  %s2825_s0 = inlined_call_operand.vmem [shape: bf16[8,1152], index: 0, kind: input, shape index: {}]   ;;  %s2826_s2 = inlined_call_operand.vmem [shape: f32[1,256], index: 2, kind: input, shape index: {}]   ;;  %s2827_s3 = inlined_call_operand.vmem [shape: bf16[8,256], index: 3, kind: output, shape index: {}]  }
   0x1   :  { %v1221_v0 = vld [vmem:[%s2824_s1 + $0x70] sm:$0xf]  ;;  %v1754_v1 = vld [vmem:[%s2824_s1 + $0x74] sm:$0xf0]  ;;  %v1213_v9 = vld [vmem:[%s2824_s1 + $0x60] sm:$0xf] }
   0x2   :  { %v1285_v2 = vld [vmem:[%s2824_s1 + $0xf0] sm:$0xf]  ;;  %v1222_v3 = vor.u32 %v1754_v1, %v1221_v0  ;;  %v1770_v4 = vld [vmem:[%s2824_s1 + $0xf4] sm:$0xf0]  ;;  %v1752_v10 = vld [vmem:[%s2824_s1 + $0x64] sm:$0xf0] }
   0x3   :  { %v1349_v5 = vld [vmem:[%s2824_s1 + $0x170] sm:$0xf]  ;;  %v1786_v6 = vld [vmem:[%s2824_s1 + $0x174] sm:$0xf0]  ;;  %v1286_v7 = vor.u32 %v1770_v4, %v1285_v2  ;;  %v1277_v11 = vld [vmem:[%s2824_s1 + $0xe0] sm:$0xf]  ;;  %v1214_v12 = vor.u32 %v1752_v10, %v1213_v9 }
   0x4   :  { %v1350_v8 = vor.u32 %v1786_v6, %v1349_v5  ;;  %921 = vmatpush.bf16.msra.mxu0 %v1222_v3  ;;  %v1768_v13 = vld [vmem:[%s2824_s1 + $0xe4] sm:$0xf0]  ;;  %v1413_v14 = vld [vmem:[%s2824_s1 + $0x1f0] sm:$0xf]  ;;  %v1802_v15 = vld [vmem:[%s2824_s1 + $0x1f4] sm:$0xf0] }
   0x5   :  { %934 = vmatpush.bf16.msra.mxu1 %v1286_v7  ;;  %v1278_v16 = vor.u32 %v1768_v13, %v1277_v11  ;;  %v1414_v17 = vor.u32 %v1802_v15, %v1413_v14  ;;  %v1341_v18 = vld [vmem:[%s2824_s1 + $0x160] sm:$0xf]  ;;  %v1784_v19 = vld [vmem:[%s2824_s1 + $0x164] sm:$0xf0]  ;;  %v1205_v20 = vld [vmem:[%s2824_s1 + $0x50] sm:$0xf] }
   0x6   :  { %947 = vmatpush.bf16.msra.mxu2 %v1350_v8  ;;  %v1342_v21 = vor.u32 %v1784_v19, %v1341_v18  ;;  %v1750_v22 = vld [vmem:[%s2824_s1 + $0x54] sm:$0xf0]  ;;  %v1269_v23 = vld [vmem:[%s2824_s1 + $0xd0] sm:$0xf]  ;;  %v1405_v25 = vld [vmem:[%s2824_s1 + $0x1e0] sm:$0xf] }
   0x7   :  { %v1766_v24 = vld [vmem:[%s2824_s1 + $0xd4] sm:$0xf0]  ;;  %960 = vmatpush.bf16.msra.mxu3 %v1414_v17  ;;  %v1800_v26 = vld [vmem:[%s2824_s1 + $0x1e4] sm:$0xf0]  ;;  %v1333_v27 = vld [vmem:[%s2824_s1 + $0x150] sm:$0xf]  ;;  %v1206_v28 = vor.u32 %v1750_v22, %v1205_v20 }
   0x8   :  { %922 = vmatpush.bf16.msra.mxu0 %v1214_v12  ;;  %v1406_v29 = vor.u32 %v1800_v26, %v1405_v25  ;;  %v1782_v30 = vld [vmem:[%s2824_s1 + $0x154] sm:$0xf0]  ;;  %v1197_v31 = vld [vmem:[%s2824_s1 + $0x40] sm:$0xf]  ;;  %v1748_v32 = vld [vmem:[%s2824_s1 + $0x44] sm:$0xf0]  ;;  %v1270_v33 = vor.u32 %v1766_v24, %v1269_v23 }
   0x9   :  { %935 = vmatpush.bf16.msra.mxu1 %v1278_v16  ;;  %v1334_v34 = vor.u32 %v1782_v30, %v1333_v27  ;;  %v1261_v35 = vld [vmem:[%s2824_s1 + $0xc0] sm:$0xf]  ;;  %v1764_v36 = vld [vmem:[%s2824_s1 + $0xc4] sm:$0xf0]  ;;  %v1397_v37 = vld [vmem:[%s2824_s1 + $0x1d0] sm:$0xf]  ;;  %v1198_v42 = vor.u32 %v1748_v32, %v1197_v31 }
   0xa   :  { %948 = vmatpush.bf16.msra.mxu2 %v1342_v21  ;;  %v1798_v38 = vld [vmem:[%s2824_s1 + $0x1d4] sm:$0xf0]  ;;  %v1325_v39 = vld [vmem:[%s2824_s1 + $0x140] sm:$0xf]  ;;  %v1780_v40 = vld [vmem:[%s2824_s1 + $0x144] sm:$0xf0]  ;;  %v1262_v45 = vor.u32 %v1764_v36, %v1261_v35 }
   0xb   :  { %961 = vmatpush.bf16.msra.mxu3 %v1406_v29  ;;  %v1398_v41 = vor.u32 %v1798_v38, %v1397_v37  ;;  %v1389_v43 = vld [vmem:[%s2824_s1 + $0x1c0] sm:$0xf]  ;;  %v1796_v44 = vld [vmem:[%s2824_s1 + $0x1c4] sm:$0xf0]  ;;  %v1326_v46 = vor.u32 %v1780_v40, %v1325_v39  ;;  %v1189_v47 = vld [vmem:[%s2824_s1 + $0x30] sm:$0xf] }
   0xc   :  { %923 = vmatpush.bf16.msra.mxu0 %v1206_v28  ;;  %v1746_v48 = vld [vmem:[%s2824_s1 + $0x34] sm:$0xf0]  ;;  %v1253_v49 = vld [vmem:[%s2824_s1 + $0xb0] sm:$0xf]  ;;  %v1390_v53 = vor.u32 %v1796_v44, %v1389_v43  ;;  %v1181_v59 = vld [vmem:[%s2824_s1 + $0x20] sm:$0xf] }
   0xd   :  { %936 = vmatpush.bf16.msra.mxu1 %v1270_v33  ;;  %v1762_v50 = vld [vmem:[%s2824_s1 + $0xb4] sm:$0xf0]  ;;  %v1317_v51 = vld [vmem:[%s2824_s1 + $0x130] sm:$0xf]  ;;  %v1190_v54 = vor.u32 %v1746_v48, %v1189_v47  ;;  %v1744_v60 = vld [vmem:[%s2824_s1 + $0x24] sm:$0xf0] }
   0xe   :  { %949 = vmatpush.bf16.msra.mxu2 %v1334_v34  ;;  %v1778_v52 = vld [vmem:[%s2824_s1 + $0x134] sm:$0xf0]  ;;  %v1381_v55 = vld [vmem:[%s2824_s1 + $0x1b0] sm:$0xf]  ;;  %v1254_v57 = vor.u32 %v1762_v50, %v1253_v49  ;;  %v1245_v61 = vld [vmem:[%s2824_s1 + $0xa0] sm:$0xf]  ;;  %v1182_v2 = vor.u32 %v1744_v60, %v1181_v59 }
   0xf   :  { %962 = vmatpush.bf16.msra.mxu3 %v1398_v41  ;;  %v1794_v56 = vld [vmem:[%s2824_s1 + $0x1b4] sm:$0xf0]  ;;  %v1318_v58 = vor.u32 %v1778_v52, %v1317_v51  ;;  %v1760_v62 = vld [vmem:[%s2824_s1 + $0xa4] sm:$0xf0]  ;;  %v1309_v63 = vld [vmem:[%s2824_s1 + $0x120] sm:$0xf] }
  0x10   :  { %924 = vmatpush.bf16.msra.mxu0 %v1198_v42  ;;  %v1776_v0 = vld [vmem:[%s2824_s1 + $0x124] sm:$0xf0]  ;;  %v1382_v1 = vor.u32 %v1794_v56, %v1381_v55  ;;  %v1373_v3 = vld [vmem:[%s2824_s1 + $0x1a0] sm:$0xf]  ;;  %v1246_v5 = vor.u32 %v1760_v62, %v1245_v61  ;;  %v1173_v7 = vld [vmem:[%s2824_s1 + $0x10] sm:$0xf] }
  0x11   :  { %937 = vmatpush.bf16.msra.mxu1 %v1262_v45  ;;  %v1792_v4 = vld [vmem:[%s2824_s1 + $0x1a4] sm:$0xf0]  ;;  %v1310_v6 = vor.u32 %v1776_v0, %v1309_v63  ;;  %v1742_v8 = vld [vmem:[%s2824_s1 + $0x14] sm:$0xf0]  ;;  %v1237_v9 = vld [vmem:[%s2824_s1 + $0x90] sm:$0xf] }
  0x12   :  { %950 = vmatpush.bf16.msra.mxu2 %v1326_v46  ;;  %v1758_v10 = vld [vmem:[%s2824_s1 + $0x94] sm:$0xf0]  ;;  %v1301_v11 = vld [vmem:[%s2824_s1 + $0x110] sm:$0xf]  ;;  %v1374_v13 = vor.u32 %v1792_v4, %v1373_v3  ;;  %v1165_v14 = vld [vmem:[%s2824_s1] sm:$0xf]  ;;  %v1174_v15 = vor.u32 %v1742_v8, %v1173_v7 }
  0x13   :  { %963 = vmatpush.bf16.msra.mxu3 %v1390_v53  ;;  %v1774_v12 = vld [vmem:[%s2824_s1 + $0x114] sm:$0xf0]  ;;  %v1740_v16 = vld [vmem:[%s2824_s1 + $0x4] sm:$0xf0]  ;;  %v1365_v17 = vld [vmem:[%s2824_s1 + $0x190] sm:$0xf]  ;;  %v1238_v19 = vor.u32 %v1758_v10, %v1237_v9 }
  0x14   :  { %925 = vmatpush.bf16.msra.mxu0 %v1190_v54  ;;  %v1790_v18 = vld [vmem:[%s2824_s1 + $0x194] sm:$0xf0]  ;;  %v1302_v20 = vor.u32 %v1774_v12, %v1301_v11  ;;  %v1229_v21 = vld [vmem:[%s2824_s1 + $0x80] sm:$0xf]  ;;  %v1756_v22 = vld [vmem:[%s2824_s1 + $0x84] sm:$0xf0]  ;;  %v1166_v31 = vor.u32 %v1740_v16, %v1165_v14 }
  0x15   :  { %938 = vmatpush.bf16.msra.mxu1 %v1254_v57  ;;  %v1477_v23 = vld [vmem:[%s2824_s1 + $0x270] sm:$0xf]  ;;  %v1818_v24 = vld [vmem:[%s2824_s1 + $0x274] sm:$0xf0]  ;;  %v1366_v27 = vor.u32 %v1790_v18, %v1365_v17  ;;  %v1293_v28 = vld [vmem:[%s2824_s1 + $0x100] sm:$0xf]  ;;  %v1230_v35 = vor.u32 %v1756_v22, %v1229_v21 }
  0x16   :  { %951 = vmatpush.bf16.msra.mxu2 %v1318_v58  ;;  %v1541_v25 = vld [vmem:[%s2824_s1 + $0x2f0] sm:$0xf]  ;;  %v1834_v26 = vld [vmem:[%s2824_s1 + $0x2f4] sm:$0xf0]  ;;  %v1772_v29 = vld [vmem:[%s2824_s1 + $0x104] sm:$0xf0]  ;;  %v1478_v36 = vor.u32 %v1818_v24, %v1477_v23 }
  0x17   :  { %964 = vmatpush.bf16.msra.mxu3 %v1382_v1  ;;  %v1605_v30 = vld [vmem:[%s2824_s1 + $0x370] sm:$0xf]  ;;  %v1850_v32 = vld [vmem:[%s2824_s1 + $0x374] sm:$0xf0]  ;;  %v1357_v33 = vld [vmem:[%s2824_s1 + $0x180] sm:$0xf]  ;;  %v1542_v39 = vor.u32 %v1834_v26, %v1541_v25  ;;  %v1294_v40 = vor.u32 %v1772_v29, %v1293_v28 }
  0x18   :  { %926 = vmatpush.bf16.msra.mxu0 %v1182_v2  ;;  %v1788_v34 = vld [vmem:[%s2824_s1 + $0x184] sm:$0xf0]  ;;  %v1669_v37 = vld [vmem:[%s2824_s1 + $0x3f0] sm:$0xf]  ;;  %v1866_v38 = vld [vmem:[%s2824_s1 + $0x3f4] sm:$0xf0]  ;;  %v1606_v43 = vor.u32 %v1850_v32, %v1605_v30 }
  0x19   :  { %939 = vmatpush.bf16.msra.mxu1 %v1246_v5  ;;  %v1469_v41 = vld [vmem:[%s2824_s1 + $0x260] sm:$0xf]  ;;  %v1816_v42 = vld [vmem:[%s2824_s1 + $0x264] sm:$0xf0]  ;;  %v1358_v44 = vor.u32 %v1788_v34, %v1357_v33  ;;  %v1670_v47 = vor.u32 %v1866_v38, %v1669_v37  ;;  %v1461_v54 = vld [vmem:[%s2824_s1 + $0x250] sm:$0xf] }
  0x1a   :  { %952 = vmatpush.bf16.msra.mxu2 %v1310_v6  ;;  %v1533_v45 = vld [vmem:[%s2824_s1 + $0x2e0] sm:$0xf]  ;;  %v1832_v46 = vld [vmem:[%s2824_s1 + $0x2e4] sm:$0xf0]  ;;  %v1470_v50 = vor.u32 %v1816_v42, %v1469_v41  ;;  %v1814_v55 = vld [vmem:[%s2824_s1 + $0x254] sm:$0xf0] }
  0x1b   :  { %965 = vmatpush.bf16.msra.mxu3 %v1374_v13  ;;  %v1597_v48 = vld [vmem:[%s2824_s1 + $0x360] sm:$0xf]  ;;  %v1848_v49 = vld [vmem:[%s2824_s1 + $0x364] sm:$0xf0]  ;;  %v1534_v53 = vor.u32 %v1832_v46, %v1533_v45  ;;  %v1525_v58 = vld [vmem:[%s2824_s1 + $0x2d0] sm:$0xf]  ;;  %v1462_v4 = vor.u32 %v1814_v55, %v1461_v54 }
  0x1c   :  { %927 = vmatpush.bf16.msra.mxu0 %v1174_v15  ;;  %v1661_v51 = vld [vmem:[%s2824_s1 + $0x3e0] sm:$0xf]  ;;  %v1864_v52 = vld [vmem:[%s2824_s1 + $0x3e4] sm:$0xf0]  ;;  %v1598_v57 = vor.u32 %v1848_v49, %v1597_v48  ;;  %v1830_v59 = vld [vmem:[%s2824_s1 + $0x2d4] sm:$0xf0] }
  0x1d   :  { %940 = vmatpush.bf16.msra.mxu1 %v1238_v19  ;;  %v15_v56 = vld [vmem:[%s2825_s0 + $0x8] sm:$0xff]  ;;  %v14_v61 = vld [vmem:[%s2825_s0] sm:$0xff]  ;;  %v1662_v63 = vor.u32 %v1864_v52, %v1661_v51  ;;  %v1589_v0 = vld [vmem:[%s2824_s1 + $0x350] sm:$0xf]  ;;  %v1526_v9 = vor.u32 %v1830_v59, %v1525_v58 }
  0x1e   :  { %953 = vmatpush.bf16.msra.mxu2 %v1302_v20  ;;  %v176_v60 = vunpack.c.l.b16 %v15_v56  ;;  %v177_v62 = vunpack.c.h.b16 %v15_v56  ;;  %v1846_v1 = vld [vmem:[%s2824_s1 + $0x354] sm:$0xf0]  ;;  %v174_v2 = vunpack.c.l.b16 %v14_v61  ;;  %v175_v3 = vunpack.c.h.b16 %v14_v61  ;;  %v1653_v5 = vld [vmem:[%s2824_s1 + $0x3d0] sm:$0xf]  ;;  %v1453_v10 = vld [vmem:[%s2824_s1 + $0x240] sm:$0xf] }
  0x1f   :  { %966 = vmatpush.bf16.msra.mxu3 %v1366_v27  ;;  %v1862_v6 = vld [vmem:[%s2824_s1 + $0x3d4] sm:$0xf0]  ;;  %v1812_v11 = vld [vmem:[%s2824_s1 + $0x244] sm:$0xf0]  ;;  %v1590_v14 = vor.u32 %v1846_v1, %v1589_v0  ;;  %v1517_v15 = vld [vmem:[%s2824_s1 + $0x2c0] sm:$0xf] }
  0x20   :  { %928 = vmatpush.bf16.msra.mxu0 %v1166_v31  ;;  %v2173_v7 = vpack.c.b16 %v176_v60, %v176_v60  ;;  %v2175_v8 = vpack.c.b16 %v177_v62, %v177_v62  ;;  %v2183_v12 = vpack.c.b16 %v174_v2, %v174_v2  ;;  %v2185_v13 = vpack.c.b16 %v175_v3, %v175_v3  ;;  %v1828_v16 = vld [vmem:[%s2824_s1 + $0x2c4] sm:$0xf0]  ;;  %v1581_v18 = vld [vmem:[%s2824_s1 + $0x340] sm:$0xf]  ;;  %v1445_v24 = vld [vmem:[%s2824_s1 + $0x230] sm:$0xf] }
  0x21   :  { %941 = vmatpush.bf16.msra.mxu1 %v1230_v35  ;;  %v1654_v17 = vor.u32 %v1862_v6, %v1653_v5  ;;  %v1844_v19 = vld [vmem:[%s2824_s1 + $0x344] sm:$0xf0]  ;;  %v1454_v20 = vor.u32 %v1812_v11, %v1453_v10  ;;  %v1645_v21 = vld [vmem:[%s2824_s1 + $0x3c0] sm:$0xf]  ;;  %v1518_v23 = vor.u32 %v1828_v16, %v1517_v15  ;;  %v1810_v25 = vld [vmem:[%s2824_s1 + $0x234] sm:$0xf0] }
  0x22   :  { %954 = vmatpush.bf16.msra.mxu2 %v1294_v40  ;;  %v1860_v22 = vld [vmem:[%s2824_s1 + $0x3c4] sm:$0xf0]  ;;  %v1582_v26 = vor.u32 %v1844_v19, %v1581_v18  ;;  %v1509_v27 = vld [vmem:[%s2824_s1 + $0x2b0] sm:$0xf]  ;;  %v1826_v28 = vld [vmem:[%s2824_s1 + $0x2b4] sm:$0xf0]  ;;  %v1446_v32 = vor.u32 %v1810_v25, %v1445_v24 }
  0x23   :  { %967 = vmatpush.bf16.msra.mxu3 %v1358_v44  ;;  %929 = vmatmul.bf16.vlgmr.msra.gmra.mxu0 %v2183_v12  ;;  %v1646_v29 = vor.u32 %v1860_v22, %v1645_v21  ;;  %v1573_v30 = vld [vmem:[%s2824_s1 + $0x330] sm:$0xf]  ;;  %v1842_v31 = vld [vmem:[%s2824_s1 + $0x334] sm:$0xf0]  ;;  %v1510_v35 = vor.u32 %v1826_v28, %v1509_v27  ;;  %v1808_v37 = vld [vmem:[%s2824_s1 + $0x224] sm:$0xf0] }
  0x24   :  { %973 = vmatpush.bf16.msrb.mxu0 %v1478_v36  ;;  %942 = vmatmul.bf16.vlgmr.msra.gmra.mxu1 %v2185_v13  ;;  %v1637_v33 = vld [vmem:[%s2824_s1 + $0x3b0] sm:$0xf]  ;;  %v1858_v34 = vld [vmem:[%s2824_s1 + $0x3b4] sm:$0xf0]  ;;  %v1437_v36 = vld [vmem:[%s2824_s1 + $0x220] sm:$0xf]  ;;  %v1574_v38 = vor.u32 %v1842_v31, %v1573_v30 }
  0x25   :  { %986 = vmatpush.bf16.msrb.mxu1 %v1542_v39  ;;  %955 = vmatmul.bf16.vlgmr.msra.gmra.mxu2 %v2173_v7  ;;  %v1501_v39 = vld [vmem:[%s2824_s1 + $0x2a0] sm:$0xf]  ;;  %v1824_v40 = vld [vmem:[%s2824_s1 + $0x2a4] sm:$0xf0]  ;;  %v1638_v41 = vor.u32 %v1858_v34, %v1637_v33  ;;  %v1438_v44 = vor.u32 %v1808_v37, %v1437_v36  ;;  %v1429_v48 = vld [vmem:[%s2824_s1 + $0x210] sm:$0xf] }
  0x26   :  { %999 = vmatpush.bf16.msrb.mxu2 %v1606_v43  ;;  %968 = vmatmul.bf16.vlgmr.msra.gmra.mxu3 %v2175_v8  ;;  %v1565_v42 = vld [vmem:[%s2824_s1 + $0x320] sm:$0xf]  ;;  %v1840_v43 = vld [vmem:[%s2824_s1 + $0x324] sm:$0xf0]  ;;  %v1806_v49 = vld [vmem:[%s2824_s1 + $0x214] sm:$0xf0] }
  0x27   :  { %1012 = vmatpush.bf16.msrb.mxu3 %v1670_v47  ;;  %v1629_v45 = vld [vmem:[%s2824_s1 + $0x3a0] sm:$0xf]  ;;  %v1856_v46 = vld [vmem:[%s2824_s1 + $0x3a4] sm:$0xf0]  ;;  %v1502_v47 = vor.u32 %v1824_v40, %v1501_v39  ;;  %v1493_v51 = vld [vmem:[%s2824_s1 + $0x290] sm:$0xf]  ;;  %v1430_v58 = vor.u32 %v1806_v49, %v1429_v48 }
  0x28   :  { %974 = vmatpush.bf16.msrb.mxu0 %v1470_v50  ;;  %v1566_v50 = vor.u32 %v1840_v43, %v1565_v42  ;;  %v1822_v52 = vld [vmem:[%s2824_s1 + $0x294] sm:$0xf0]  ;;  %v1630_v54 = vor.u32 %v1856_v46, %v1629_v45  ;;  %v1421_v56 = vld [vmem:[%s2824_s1 + $0x200] sm:$0xf]  ;;  %v1820_v60 = vld [vmem:[%s2824_s1 + $0x284] sm:$0xf0] }
  0x29   :  { %987 = vmatpush.bf16.msrb.mxu1 %v1534_v53  ;;  %v1557_v53 = vld [vmem:[%s2824_s1 + $0x310] sm:$0xf]  ;;  %v1838_v55 = vld [vmem:[%s2824_s1 + $0x314] sm:$0xf0]  ;;  %v1485_v59 = vld [vmem:[%s2824_s1 + $0x280] sm:$0xf] }
  0x2a   :  { %1000 = vmatpush.bf16.msrb.mxu2 %v1598_v57  ;;  %v1804_v57 = vld [vmem:[%s2824_s1 + $0x204] sm:$0xf0]  ;;  %v1621_v61 = vld [vmem:[%s2824_s1 + $0x390] sm:$0xf]  ;;  %v1854_v62 = vld [vmem:[%s2824_s1 + $0x394] sm:$0xf0]  ;;  %v1558_v3 = vor.u32 %v1838_v55, %v1557_v53 }
  0x2b   :  { %1013 = vmatpush.bf16.msrb.mxu3 %v1662_v63  ;;  %v1494_v63 = vor.u32 %v1822_v52, %v1493_v51  ;;  %v1733_v0 = vld [vmem:[%s2824_s1 + $0x470] sm:$0xf]  ;;  %v1882_v1 = vld [vmem:[%s2824_s1 + $0x474] sm:$0xf0]  ;;  %v1223_v5 = vld [vmem:[%s2824_s1 + $0x78] sm:$0xf0]  ;;  %v1422_v15 = vor.u32 %v1804_v57, %v1421_v56 }
  0x2c   :  { %975 = vmatpush.bf16.msrb.mxu0 %v1462_v4  ;;  %v16_v2 = vld [vmem:[%s2825_s0 + $0x10] sm:$0xff]  ;;  %v17_v6 = vld [vmem:[%s2825_s0 + $0x18] sm:$0xff]  ;;  %v1549_v10 = vld [vmem:[%s2824_s1 + $0x300] sm:$0xf]  ;;  %v1734_v21 = vor.u32 %v1882_v1, %v1733_v0 }
  0x2d   :  { %988 = vmatpush.bf16.msrb.mxu1 %v1526_v9  ;;  %v1753_v4 = vld [vmem:[%s2824_s1 + $0x74] sm:$0xf]  ;;  %v1622_v9 = vor.u32 %v1854_v62, %v1621_v61  ;;  %v1836_v11 = vld [vmem:[%s2824_s1 + $0x304] sm:$0xf0]  ;;  %v1287_v16 = vld [vmem:[%s2824_s1 + $0xf8] sm:$0xf0]  ;;  %v178_v19 = vunpack.c.l.b16 %v16_v2  ;;  %v180_v24 = vunpack.c.l.b16 %v17_v6  ;;  %v179_v34 = vunpack.c.h.b16 %v16_v2 }
  0x2e   :  { %1001 = vmatpush.bf16.msrb.mxu2 %v1590_v14  ;;  %v1769_v14 = vld [vmem:[%s2824_s1 + $0xf4] sm:$0xf]  ;;  %v1852_v18 = vld [vmem:[%s2824_s1 + $0x384] sm:$0xf0]  ;;  %v1226_v25 = vor.u32 %v1753_v4, %v1223_v5  ;;  %v1725_v27 = vld [vmem:[%s2824_s1 + $0x460] sm:$0xf] }
  0x2f   :  { %1014 = vmatpush.bf16.msrb.mxu3 %v1654_v17  ;;  %v1613_v17 = vld [vmem:[%s2824_s1 + $0x380] sm:$0xf]  ;;  %v1785_v22 = vld [vmem:[%s2824_s1 + $0x174] sm:$0xf]  ;;  %v1880_v28 = vld [vmem:[%s2824_s1 + $0x464] sm:$0xf0]  ;;  %v1290_v30 = vor.u32 %v1769_v14, %v1287_v16  ;;  %v2355_v40 = vpack.c.b16 %v180_v24, %v180_v24 }
  0x30   :  { %976 = vmatpush.bf16.msrb.mxu0 %v1454_v20  ;;  %v1486_v20 = vor.u32 %v1820_v60, %v1485_v59  ;;  %v1614_v31 = vor.u32 %v1852_v18, %v1613_v17  ;;  %v1215_v33 = vld [vmem:[%s2824_s1 + $0x68] sm:$0xf0]  ;;  %v1767_v36 = vld [vmem:[%s2824_s1 + $0xe4] sm:$0xf]  ;;  %v1726_v39 = vor.u32 %v1880_v28, %v1725_v27  ;;  %v1717_v45 = vld [vmem:[%s2824_s1 + $0x450] sm:$0xf] }
  0x31   :  { %989 = vmatpush.bf16.msrb.mxu1 %v1518_v23  ;;  %v1351_v23 = vld [vmem:[%s2824_s1 + $0x178] sm:$0xf0]  ;;  %v1279_v37 = vld [vmem:[%s2824_s1 + $0xe8] sm:$0xf0]  ;;  %v1878_v46 = vld [vmem:[%s2824_s1 + $0x454] sm:$0xf0] }
  0x32   :  { %1002 = vmatpush.bf16.msrb.mxu2 %v1582_v26  ;;  %v1550_v26 = vor.u32 %v1836_v11, %v1549_v10  ;;  %v1343_v42 = vld [vmem:[%s2824_s1 + $0x168] sm:$0xf0]  ;;  %v1749_v48 = vld [vmem:[%s2824_s1 + $0x54] sm:$0xf]  ;;  %v1207_v49 = vld [vmem:[%s2824_s1 + $0x58] sm:$0xf0] }
  0x33   :  { %1015 = vmatpush.bf16.msrb.mxu3 %v1646_v29  ;;  %v181_v29 = vunpack.c.h.b16 %v17_v6  ;;  %v1765_v52 = vld [vmem:[%s2824_s1 + $0xd4] sm:$0xf]  ;;  %v1271_v53 = vld [vmem:[%s2824_s1 + $0xd8] sm:$0xf0]  ;;  %v1210_v57 = vor.u32 %v1749_v48, %v1207_v49  ;;  %v1876_v59 = vld [vmem:[%s2824_s1 + $0x444] sm:$0xf0] }
  0x34   :  { %977 = vmatpush.bf16.msrb.mxu0 %v1446_v32  ;;  %v1751_v32 = vld [vmem:[%s2824_s1 + $0x64] sm:$0xf]  ;;  %v1781_v55 = vld [vmem:[%s2824_s1 + $0x154] sm:$0xf]  ;;  %v1335_v56 = vld [vmem:[%s2824_s1 + $0x158] sm:$0xf0]  ;;  %v1274_v60 = vor.u32 %v1765_v52, %v1271_v53 }
  0x35   :  { %990 = vmatpush.bf16.msrb.mxu1 %v1510_v35  ;;  %v1354_v35 = vor.u32 %v1785_v22, %v1351_v23  ;;  %v1218_v43 = vor.u32 %v1751_v32, %v1215_v33  ;;  %v1747_v61 = vld [vmem:[%s2824_s1 + $0x44] sm:$0xf]  ;;  %v1199_v62 = vld [vmem:[%s2824_s1 + $0x48] sm:$0xf0]  ;;  %v1701_v6 = vld [vmem:[%s2824_s1 + $0x430] sm:$0xf] }
  0x36   :  { %1003 = vmatpush.bf16.msrb.mxu2 %v1574_v38  ;;  %v2353_v38 = vpack.c.b16 %v178_v19, %v178_v19  ;;  %v1763_v0 = vld [vmem:[%s2824_s1 + $0xc4] sm:$0xf]  ;;  %v1263_v1 = vld [vmem:[%s2824_s1 + $0xc8] sm:$0xf0]  ;;  %v1202_v5 = vor.u32 %v1747_v61, %v1199_v62  ;;  %v1745_v11 = vld [vmem:[%s2824_s1 + $0x34] sm:$0xf] }
  0x37   :  { %1016 = vmatpush.bf16.msrb.mxu3 %v1638_v41  ;;  %v1783_v41 = vld [vmem:[%s2824_s1 + $0x164] sm:$0xf]  ;;  %v1327_v4 = vld [vmem:[%s2824_s1 + $0x148] sm:$0xf0]  ;;  %v1266_v10 = vor.u32 %v1763_v0, %v1263_v1  ;;  %v1191_v14 = vld [vmem:[%s2824_s1 + $0x38] sm:$0xf0] }
  0x38   :  { %978 = vmatpush.bf16.msrb.mxu0 %v1438_v44  ;;  %v2363_v44 = vpack.c.b16 %v181_v29, %v181_v29  ;;  %v1346_v51 = vor.u32 %v1783_v41, %v1343_v42  ;;  %v1761_v16 = vld [vmem:[%s2824_s1 + $0xb4] sm:$0xf]  ;;  %v1255_v17 = vld [vmem:[%s2824_s1 + $0xb8] sm:$0xf0]  ;;  %v1693_v22 = vld [vmem:[%s2824_s1 + $0x420] sm:$0xf] }
  0x39   :  { %991 = vmatpush.bf16.msrb.mxu1 %v1502_v47  ;;  %v1282_v47 = vor.u32 %v1767_v36, %v1279_v37  ;;  %v1777_v19 = vld [vmem:[%s2824_s1 + $0x134] sm:$0xf]  ;;  %v1872_v23 = vld [vmem:[%s2824_s1 + $0x424] sm:$0xf0]  ;;  %v1258_v24 = vor.u32 %v1761_v16, %v1255_v17  ;;  %v1759_v28 = vld [vmem:[%s2824_s1 + $0xa4] sm:$0xf] }
  0x3a   :  { %1004 = vmatpush.bf16.msrb.mxu2 %v1566_v50  ;;  %v2377_v50 = vpack.c.b16 %v179_v34, %v179_v34  ;;  %v1247_v29 = vld [vmem:[%s2824_s1 + $0xa8] sm:$0xf0]  ;;  %v1685_v34 = vld [vmem:[%s2824_s1 + $0x410] sm:$0xf]  ;;  %v1741_v37 = vld [vmem:[%s2824_s1 + $0x14] sm:$0xf] }
  0x3b   :  { %1017 = vmatpush.bf16.msrb.mxu3 %v1630_v54  ;;  %v1718_v54 = vor.u32 %v1878_v46, %v1717_v45  ;;  %v1311_v32 = vld [vmem:[%s2824_s1 + $0x128] sm:$0xf0]  ;;  %v1250_v36 = vor.u32 %v1759_v28, %v1247_v29  ;;  %v1757_v42 = vld [vmem:[%s2824_s1 + $0x94] sm:$0xf]  ;;  %v1677_v45 = vld [vmem:[%s2824_s1 + $0x400] sm:$0xf] }
  0x3c   :  { %979 = vmatpush.bf16.msrb.mxu0 %v1430_v58  ;;  %v1709_v58 = vld [vmem:[%s2824_s1 + $0x440] sm:$0xf]  ;;  %v1303_v48 = vld [vmem:[%s2824_s1 + $0x118] sm:$0xf0]  ;;  %v1868_v52 = vld [vmem:[%s2824_s1 + $0x404] sm:$0xf0] }
  0x3d   :  { %992 = vmatpush.bf16.msrb.mxu1 %v1494_v63  ;;  %v1338_v63 = vor.u32 %v1781_v55, %v1335_v56  ;;  %v1710_v2 = vor.u32 %v1876_v59, %v1709_v58  ;;  %v18_v49 = vld [vmem:[%s2825_s0 + $0x20] sm:$0xf]  ;;  %v1739_v53 = vld [vmem:[%s2824_s1 + $0x4] sm:$0xf]  ;;  %v1801_v56 = vld [vmem:[%s2824_s1 + $0x1f4] sm:$0xf]  ;;  %v1678_v0 = vor.u32 %v1868_v52, %v1677_v45 }
  0x3e   :  { %1005 = vmatpush.bf16.msrb.mxu2 %v1558_v3  ;;  %v1779_v3 = vld [vmem:[%s2824_s1 + $0x144] sm:$0xf]  ;;  %v1817_v58 = vld [vmem:[%s2824_s1 + $0x274] sm:$0xf]  ;;  %v1231_v62 = vld [vmem:[%s2824_s1 + $0x88] sm:$0xf0] }
  0x3f   :  { %1018 = vmatpush.bf16.msrb.mxu3 %v1622_v9  ;;  %v1874_v9 = vld [vmem:[%s2824_s1 + $0x434] sm:$0xf0]  ;;  %v1755_v61 = vld [vmem:[%s2824_s1 + $0x84] sm:$0xf]  ;;  %v1833_v1 = vld [vmem:[%s2824_s1 + $0x2f4] sm:$0xf] }
  0x40   :  { %980 = vmatpush.bf16.msrb.mxu0 %v1422_v15  ;;  %v1330_v15 = vor.u32 %v1779_v3, %v1327_v4  ;;  %v1702_v18 = vor.u32 %v1874_v9, %v1701_v6  ;;  %v1295_v6 = vld [vmem:[%s2824_s1 + $0x108] sm:$0xf0]  ;;  %v1799_v9 = vld [vmem:[%s2824_s1 + $0x1e4] sm:$0xf]  ;;  %v1607_v16 = vld [vmem:[%s2824_s1 + $0x378] sm:$0xf0] }
  0x41   :  { %993 = vmatpush.bf16.msrb.mxu1 %v1486_v20  ;;  %v1319_v20 = vld [vmem:[%s2824_s1 + $0x138] sm:$0xf0]  ;;  %v1847_v29 = vld [vmem:[%s2824_s1 + $0x364] sm:$0xf]  ;;  %v1793_v52 = vld [vmem:[%s2824_s1 + $0x1b4] sm:$0xf] }
  0x42   :  { %1006 = vmatpush.bf16.msrb.mxu2 %v1550_v26  ;;  %v1183_v26 = vld [vmem:[%s2824_s1 + $0x28] sm:$0xf0]  ;;  %v1322_v27 = vor.u32 %v1777_v19, %v1319_v20  ;;  %v1815_v19 = vld [vmem:[%s2824_s1 + $0x264] sm:$0xf]  ;;  %v1399_v28 = vld [vmem:[%s2824_s1 + $0x1d8] sm:$0xf0] }
  0x43   :  { %1019 = vmatpush.bf16.msrb.mxu3 %v1614_v31  ;;  %981 = vmatmul.bf16.vlgmr.msrb.gmra.mxu0 %v2353_v38  ;;  %v1775_v31 = vld [vmem:[%s2824_s1 + $0x124] sm:$0xf]  ;;  %v1471_v20 = vld [vmem:[%s2824_s1 + $0x268] sm:$0xf0] }
  0x44   :  { %1025 = vmatpush.bf16.msra.mxu0 %v1734_v21  ;;  %994 = vmatmul.bf16.vlgmr.msrb.gmra.mxu1 %v2377_v50  ;;  %v1194_v21 = vor.u32 %v1745_v11, %v1191_v14  ;;  %v1314_v41 = vor.u32 %v1775_v31, %v1311_v32  ;;  %v1234_v11 = vor.u32 %v1755_v61, %v1231_v62  ;;  %v1407_v14 = vld [vmem:[%s2824_s1 + $0x1e8] sm:$0xf0]  ;;  %v1813_v32 = vld [vmem:[%s2824_s1 + $0x254] sm:$0xf] }
  0x45   :  { %1038 = vmatpush.bf16.msra.mxu1 %v1226_v25  ;;  %1007 = vmatmul.bf16.vlgmr.msrb.gmra.mxu2 %v2355_v40  ;;  %v1743_v25 = vld [vmem:[%s2824_s1 + $0x24] sm:$0xf] }
  0x46   :  { %1051 = vmatpush.bf16.msra.mxu2 %v1290_v30  ;;  %1020 = vmatmul.bf16.vlgmr.msrb.gmra.mxu3 %v2363_v44  ;;  %v1694_v30 = vor.u32 %v1872_v23, %v1693_v22  ;;  %v1186_v33 = vor.u32 %v1743_v25, %v1183_v26  ;;  %v1831_v22 = vld [vmem:[%s2824_s1 + $0x2e4] sm:$0xf]  ;;  %v1535_v23 = vld [vmem:[%s2824_s1 + $0x2e8] sm:$0xf0]  ;;  %v1797_v26 = vld [vmem:[%s2824_s1 + $0x1d4] sm:$0xf] }
  0x47   :  { %1064 = vmatpush.bf16.msra.mxu3 %v1354_v35  ;;  %v1870_v35 = vld [vmem:[%s2824_s1 + $0x414] sm:$0xf0]  ;;  %v1538_v31 = vor.u32 %v1831_v22, %v1535_v23  ;;  %v1805_v22 = vld [vmem:[%s2824_s1 + $0x214] sm:$0xf]  ;;  %v1431_v23 = vld [vmem:[%s2824_s1 + $0x218] sm:$0xf0] }
  0x48   :  { %1026 = vmatpush.bf16.msra.mxu0 %v1726_v39  ;;  %v1175_v39 = vld [vmem:[%s2824_s1 + $0x18] sm:$0xf0]  ;;  %v1686_v46 = vor.u32 %v1870_v35, %v1685_v34  ;;  %v1829_v34 = vld [vmem:[%s2824_s1 + $0x2d4] sm:$0xf] }
  0x49   :  { %1039 = vmatpush.bf16.msra.mxu1 %v1218_v43  ;;  %v1239_v43 = vld [vmem:[%s2824_s1 + $0x98] sm:$0xf0] }
  0x4a   :  { %1052 = vmatpush.bf16.msra.mxu2 %v1282_v47  ;;  %v1773_v47 = vld [vmem:[%s2824_s1 + $0x114] sm:$0xf]  ;;  %v1242_v55 = vor.u32 %v1757_v42, %v1239_v43  ;;  %v1527_v35 = vld [vmem:[%s2824_s1 + $0x2d8] sm:$0xf0]  ;;  %v1391_v42 = vld [vmem:[%s2824_s1 + $0x1c8] sm:$0xf0] }
  0x4b   :  { %1065 = vmatpush.bf16.msra.mxu3 %v1346_v51  ;;  %v1178_v51 = vor.u32 %v1741_v37, %v1175_v39  ;;  %v1306_v59 = vor.u32 %v1773_v47, %v1303_v48  ;;  %v1795_v39 = vld [vmem:[%s2824_s1 + $0x1c4] sm:$0xf]  ;;  %v1845_v43 = vld [vmem:[%s2824_s1 + $0x354] sm:$0xf]  ;;  %v1530_v45 = vor.u32 %v1829_v34, %v1527_v35  ;;  %v1455_v47 = vld [vmem:[%s2824_s1 + $0x248] sm:$0xf0] }
  0x4c   :  { %1027 = vmatpush.bf16.msra.mxu0 %v1718_v54  ;;  %v1167_v54 = vld [vmem:[%s2824_s1 + $0x8] sm:$0xf0]  ;;  %v1827_v48 = vld [vmem:[%s2824_s1 + $0x2c4] sm:$0xf]  ;;  %v1559_v34 = vld [vmem:[%s2824_s1 + $0x318] sm:$0xf0] }
  0x4d   :  { %1040 = vmatpush.bf16.msra.mxu1 %v1210_v57  ;;  %v1415_v57 = vld [vmem:[%s2824_s1 + $0x1f8] sm:$0xf0]  ;;  %v1170_v3 = vor.u32 %v1739_v53, %v1167_v54  ;;  %v1843_v54 = vld [vmem:[%s2824_s1 + $0x344] sm:$0xf] }
  0x4e   :  { %1053 = vmatpush.bf16.msra.mxu2 %v1274_v60  ;;  %v1479_v60 = vld [vmem:[%s2824_s1 + $0x278] sm:$0xf0]  ;;  %v1418_v4 = vor.u32 %v1801_v56, %v1415_v57  ;;  %v1809_v57 = vld [vmem:[%s2824_s1 + $0x234] sm:$0xf] }
  0x4f   :  { %1066 = vmatpush.bf16.msra.mxu3 %v1338_v63  ;;  %v182_v63 = vunpack.c.l.b16 %v18_v49  ;;  %v1394_v49 = vor.u32 %v1795_v39, %v1391_v42  ;;  %v1881_v39 = vld [vmem:[%s2824_s1 + $0x474] sm:$0xf]  ;;  %v1819_v42 = vld [vmem:[%s2824_s1 + $0x284] sm:$0xf] }
  0x50   :  { %1028 = vmatpush.bf16.msra.mxu0 %v1710_v2  ;;  %v1543_v2 = vld [vmem:[%s2824_s1 + $0x2f8] sm:$0xf0] }
  0x51   :  { %1041 = vmatpush.bf16.msra.mxu1 %v1202_v5  ;;  %v1771_v5 = vld [vmem:[%s2824_s1 + $0x104] sm:$0xf]  ;;  %v2548_v17 = vpack.c.b16 %v182_v63, %v182_v63 }
  0x52   :  { %1054 = vmatpush.bf16.msra.mxu2 %v1266_v10  ;;  %v1482_v10 = vor.u32 %v1817_v58, %v1479_v60  ;;  %v1447_v58 = vld [vmem:[%s2824_s1 + $0x238] sm:$0xf0]  ;;  %v1791_v63 = vld [vmem:[%s2824_s1 + $0x1a4] sm:$0xf] }
  0x53   :  { %1067 = vmatpush.bf16.msra.mxu3 %v1330_v15  ;;  %v1849_v15 = vld [vmem:[%s2824_s1 + $0x374] sm:$0xf]  ;;  %v1511_v60 = vld [vmem:[%s2824_s1 + $0x2b8] sm:$0xf0] }
  0x54   :  { %1029 = vmatpush.bf16.msra.mxu0 %v1702_v18  ;;  %v1546_v18 = vor.u32 %v1833_v1, %v1543_v2  ;;  %v1610_v25 = vor.u32 %v1849_v15, %v1607_v16  ;;  %v1375_v1 = vld [vmem:[%s2824_s1 + $0x1a8] sm:$0xf0]  ;;  %v1841_v2 = vld [vmem:[%s2824_s1 + $0x334] sm:$0xf] }
  0x55   :  { %1042 = vmatpush.bf16.msra.mxu1 %v1194_v21  ;;  %v1298_v21 = vor.u32 %v1771_v5, %v1295_v6  ;;  %v1807_v5 = vld [vmem:[%s2824_s1 + $0x224] sm:$0xf]  ;;  %v1439_v6 = vld [vmem:[%s2824_s1 + $0x228] sm:$0xf0]  ;;  %v1789_v15 = vld [vmem:[%s2824_s1 + $0x194] sm:$0xf] }
  0x56   :  { %1055 = vmatpush.bf16.msra.mxu2 %v1258_v24  ;;  %v1410_v24 = vor.u32 %v1799_v9, %v1407_v14  ;;  %v1823_v9 = vld [vmem:[%s2824_s1 + $0x2a4] sm:$0xf]  ;;  %v1442_v16 = vor.u32 %v1807_v5, %v1439_v6  ;;  %v1703_v5 = vld [vmem:[%s2824_s1 + $0x438] sm:$0xf0] }
  0x57   :  { %1068 = vmatpush.bf16.msra.mxu3 %v1322_v27  ;;  %v1474_v27 = vor.u32 %v1815_v19, %v1471_v20  ;;  %v1839_v19 = vld [vmem:[%s2824_s1 + $0x324] sm:$0xf]  ;;  %v1567_v20 = vld [vmem:[%s2824_s1 + $0x328] sm:$0xf0] }
  0x58   :  { %1030 = vmatpush.bf16.msra.mxu0 %v1694_v30  ;;  %v1599_v30 = vld [vmem:[%s2824_s1 + $0x368] sm:$0xf0] }
  0x59   :  { %1043 = vmatpush.bf16.msra.mxu1 %v1186_v33  ;;  %v1463_v33 = vld [vmem:[%s2824_s1 + $0x258] sm:$0xf0]  ;;  %v1602_v37 = vor.u32 %v1847_v29, %v1599_v30  ;;  %v1359_v29 = vld [vmem:[%s2824_s1 + $0x188] sm:$0xf0]  ;;  %v1803_v30 = vld [vmem:[%s2824_s1 + $0x204] sm:$0xf] }
  0x5a   :  { %1056 = vmatpush.bf16.msra.mxu2 %v1250_v36  ;;  %v1402_v36 = vor.u32 %v1797_v26, %v1399_v28  ;;  %v1787_v28 = vld [vmem:[%s2824_s1 + $0x184] sm:$0xf] }
  0x5b   :  { %1069 = vmatpush.bf16.msra.mxu3 %v1314_v41  ;;  %v1466_v41 = vor.u32 %v1813_v32, %v1463_v33  ;;  %v1423_v32 = vld [vmem:[%s2824_s1 + $0x208] sm:$0xf0]  ;;  %v1837_v33 = vld [vmem:[%s2824_s1 + $0x314] sm:$0xf] }
  0x5c   :  { %1031 = vmatpush.bf16.msra.mxu0 %v1686_v46  ;;  %v1811_v46 = vld [vmem:[%s2824_s1 + $0x244] sm:$0xf] }
  0x5d   :  { %1044 = vmatpush.bf16.msra.mxu1 %v1178_v51  ;;  %v1458_v53 = vor.u32 %v1811_v46, %v1455_v47  ;;  %v1426_v46 = vor.u32 %v1803_v30, %v1423_v32 }
  0x5e   :  { %1057 = vmatpush.bf16.msra.mxu2 %v1242_v55  ;;  %v1583_v55 = vld [vmem:[%s2824_s1 + $0x348] sm:$0xf0] }
  0x5f   :  { %1070 = vmatpush.bf16.msra.mxu3 %v1306_v59  ;;  %v1825_v59 = vld [vmem:[%s2824_s1 + $0x2b4] sm:$0xf]  ;;  %v1586_v62 = vor.u32 %v1843_v54, %v1583_v55  ;;  %v1727_v54 = vld [vmem:[%s2824_s1 + $0x468] sm:$0xf0] }
  0x60   :  { %1032 = vmatpush.bf16.msra.mxu0 %v1678_v0  ;;  %v1450_v0 = vor.u32 %v1809_v57, %v1447_v58  ;;  %v1861_v58 = vld [vmem:[%s2824_s1 + $0x3d4] sm:$0xf] }
  0x61   :  { %1045 = vmatpush.bf16.msra.mxu1 %v1170_v3  ;;  %v1575_v3 = vld [vmem:[%s2824_s1 + $0x338] sm:$0xf0] }
  0x62   :  { %1058 = vmatpush.bf16.msra.mxu2 %v1234_v11  ;;  %v1378_v11 = vor.u32 %v1791_v63, %v1375_v1  ;;  %v1578_v14 = vor.u32 %v1841_v2, %v1575_v3  ;;  %v1857_v3 = vld [vmem:[%s2824_s1 + $0x3b4] sm:$0xf] }
  0x63   :  { %1033 = vmatmul.bf16.vlgmr.msra.gmra.mxu0 %v2548_v17  ;;  %1071 = vmatpush.bf16.msra.mxu3 %v1298_v21 }
  0x64   :  { %1077 = vmatpush.bf16.msrb.mxu0 %v1418_v4  ;;  %1046 = vmatmul.bf16.vlgmr.msra.gmra.mxu1 %v2183_v12  ;;  %v1591_v12 = vld [vmem:[%s2824_s1 + $0x358] sm:$0xf0]  ;;  %v1514_v4 = vor.u32 %v1825_v59, %v1511_v60  ;;  %v1877_v60 = vld [vmem:[%s2824_s1 + $0x454] sm:$0xf] }
  0x65   :  { %1090 = vmatpush.bf16.msrb.mxu1 %v1482_v10  ;;  %1059 = vmatmul.bf16.vlgmr.msra.gmra.mxu2 %v2185_v13  ;;  %v1519_v13 = vld [vmem:[%s2824_s1 + $0x2c8] sm:$0xf0]  ;;  %v1594_v51 = vor.u32 %v1845_v43, %v1591_v12  ;;  %v1362_v12 = vor.u32 %v1787_v28, %v1359_v29  ;;  %v1655_v59 = vld [vmem:[%s2824_s1 + $0x3d8] sm:$0xf0] }
  0x66   :  { %1103 = vmatpush.bf16.msrb.mxu2 %v1546_v18  ;;  %1072 = vmatmul.bf16.vlgmr.msra.gmra.mxu3 %v2173_v7  ;;  %v1383_v7 = vld [vmem:[%s2824_s1 + $0x1b8] sm:$0xf0]  ;;  %v1522_v56 = vor.u32 %v1827_v48, %v1519_v13  ;;  %v1503_v10 = vld [vmem:[%s2824_s1 + $0x2a8] sm:$0xf0]  ;;  %v1835_v48 = vld [vmem:[%s2824_s1 + $0x304] sm:$0xf] }
  0x67   :  { %1116 = vmatpush.bf16.msrb.mxu3 %v1610_v25  ;;  %v1386_v61 = vor.u32 %v1793_v52, %v1383_v7  ;;  %v1367_v18 = vld [vmem:[%s2824_s1 + $0x198] sm:$0xf0]  ;;  %v1506_v21 = vor.u32 %v1823_v9, %v1503_v10  ;;  %v1487_v43 = vld [vmem:[%s2824_s1 + $0x288] sm:$0xf0]  ;;  %v1863_v52 = vld [vmem:[%s2824_s1 + $0x3e4] sm:$0xf] }
  0x68   :  { %1078 = vmatpush.bf16.msrb.mxu0 %v1410_v24  ;;  %v1821_v24 = vld [vmem:[%s2824_s1 + $0x294] sm:$0xf]  ;;  %v1495_v25 = vld [vmem:[%s2824_s1 + $0x298] sm:$0xf0]  ;;  %v1370_v26 = vor.u32 %v1789_v15, %v1367_v18  ;;  %v1551_v13 = vld [vmem:[%s2824_s1 + $0x308] sm:$0xf0] }
  0x69   :  { %1091 = vmatpush.bf16.msrb.mxu1 %v1474_v27  ;;  %v1570_v27 = vor.u32 %v1839_v19, %v1567_v20  ;;  %v1498_v35 = vor.u32 %v1821_v24, %v1495_v25  ;;  %v1879_v7 = vld [vmem:[%s2824_s1 + $0x464] sm:$0xf]  ;;  %v1554_v55 = vor.u32 %v1835_v48, %v1551_v13  ;;  %v1695_v15 = vld [vmem:[%s2824_s1 + $0x428] sm:$0xf0]  ;;  %v1853_v19 = vld [vmem:[%s2824_s1 + $0x394] sm:$0xf] }
  0x6a   :  { %1104 = vmatpush.bf16.msrb.mxu2 %v1538_v31  ;;  %v1434_v31 = vor.u32 %v1805_v22, %v1431_v23  ;;  %v1730_v57 = vor.u32 %v1879_v7, %v1727_v54  ;;  %v1855_v10 = vld [vmem:[%s2824_s1 + $0x3a4] sm:$0xf]  ;;  %v1623_v20 = vld [vmem:[%s2824_s1 + $0x398] sm:$0xf0]  ;;  %v1679_v28 = vld [vmem:[%s2824_s1 + $0x408] sm:$0xf0] }
  0x6b   :  { %1117 = vmatpush.bf16.msrb.mxu3 %v1602_v37  ;;  %v1671_v37 = vld [vmem:[%s2824_s1 + $0x3f8] sm:$0xf0]  ;;  %v1626_v23 = vor.u32 %v1853_v19, %v1623_v20  ;;  %v1851_v25 = vld [vmem:[%s2824_s1 + $0x384] sm:$0xf] }
  0x6c   :  { %1079 = vmatpush.bf16.msrb.mxu0 %v1402_v36  ;;  %v1865_v36 = vld [vmem:[%s2824_s1 + $0x3f4] sm:$0xf]  ;;  %v1687_v22 = vld [vmem:[%s2824_s1 + $0x418] sm:$0xf0] }
  0x6d   :  { %1092 = vmatpush.bf16.msrb.mxu1 %v1466_v41  ;;  %v1735_v41 = vld [vmem:[%s2824_s1 + $0x478] sm:$0xf0]  ;;  %v1674_v47 = vor.u32 %v1865_v36, %v1671_v37 }
  0x6e   :  { %1105 = vmatpush.bf16.msrb.mxu2 %v1530_v45  ;;  %v1562_v45 = vor.u32 %v1837_v33, %v1559_v34 }
  0x6f   :  { %1118 = vmatpush.bf16.msrb.mxu3 %v1594_v51  ;;  %v1490_v51 = vor.u32 %v1819_v42, %v1487_v43 }
  0x70   :  { %1080 = vmatpush.bf16.msrb.mxu0 %v1394_v49  ;;  %v1738_v49 = vor.u32 %v1881_v39, %v1735_v41 }
  0x71   :  { %1093 = vmatpush.bf16.msrb.mxu1 %v1458_v53  ;;  %v1663_v53 = vld [vmem:[%s2824_s1 + $0x3e8] sm:$0xf0] }
  0x72   :  { %1106 = vmatpush.bf16.msrb.mxu2 %v1522_v56  ;;  %v1666_v56 = vor.u32 %v1863_v52, %v1663_v53 }
  0x73   :  { %1119 = vmatpush.bf16.msrb.mxu3 %v1586_v62  ;;  %v1658_v62 = vor.u32 %v1861_v58, %v1655_v59 }
  0x74   :  { %1081 = vmatpush.bf16.msrb.mxu0 %v1386_v61  ;;  %v1719_v61 = vld [vmem:[%s2824_s1 + $0x458] sm:$0xf0] }
  0x75   :  { %1094 = vmatpush.bf16.msrb.mxu1 %v1450_v0  ;;  %v1722_v63 = vor.u32 %v1877_v60, %v1719_v61  ;;  %v1647_v0 = vld [vmem:[%s2824_s1 + $0x3c8] sm:$0xf0] }
  0x76   :  { %1107 = vmatpush.bf16.msrb.mxu2 %v1514_v4  ;;  %v1873_v4 = vld [vmem:[%s2824_s1 + $0x434] sm:$0xf] }
  0x77   :  { %1120 = vmatpush.bf16.msrb.mxu3 %v1578_v14  ;;  %v1706_v9 = vor.u32 %v1873_v4, %v1703_v5  ;;  %v1871_v14 = vld [vmem:[%s2824_s1 + $0x424] sm:$0xf] }
  0x78   :  { %1082 = vmatpush.bf16.msrb.mxu0 %v1378_v11  ;;  %v1631_v11 = vld [vmem:[%s2824_s1 + $0x3a8] sm:$0xf0]  ;;  %v1698_v18 = vor.u32 %v1871_v14, %v1695_v15 }
  0x79   :  { %1095 = vmatpush.bf16.msrb.mxu1 %v1442_v16  ;;  %v1634_v16 = vor.u32 %v1855_v10, %v1631_v11 }
  0x7a   :  { %1108 = vmatpush.bf16.msrb.mxu2 %v1506_v21  ;;  %v1869_v21 = vld [vmem:[%s2824_s1 + $0x414] sm:$0xf] }
  0x7b   :  { %1121 = vmatpush.bf16.msrb.mxu3 %v1570_v27  ;;  %v1690_v24 = vor.u32 %v1869_v21, %v1687_v22  ;;  %v1867_v27 = vld [vmem:[%s2824_s1 + $0x404] sm:$0xf] }
  0x7c   :  { %1083 = vmatpush.bf16.msrb.mxu0 %v1370_v26  ;;  %v1615_v26 = vld [vmem:[%s2824_s1 + $0x388] sm:$0xf0]  ;;  %v1682_v30 = vor.u32 %v1867_v27, %v1679_v28 }
  0x7d   :  { %1096 = vmatpush.bf16.msrb.mxu1 %v1434_v31  ;;  %v1618_v29 = vor.u32 %v1851_v25, %v1615_v26  ;;  %v163_v31 = vld [vmem:[%s2826_s2] sm:$0x3] }
  0x7e   :  { %1109 = vmatpush.bf16.msrb.mxu2 %v1498_v35  ;;  %v165_v32 = vperm.slane %v163_v31, 0 }
  0x7f   :  { %1122 = vmatpush.bf16.msrb.mxu3 %v1562_v45 }
  0x80   :  { %1084 = vmatpush.bf16.msrb.mxu0 %v1362_v12 }
  0x81   :  { %1097 = vmatpush.bf16.msrb.mxu1 %v1426_v46 }
  0x82   :  { %1110 = vmatpush.bf16.msrb.mxu2 %v1490_v51 }
  0x83   :  { %1085 = vmatmul.bf16.vlgmr.msrb.gmra.mxu0 %v2175_v8  ;;  %1123 = vmatpush.bf16.msrb.mxu3 %v1554_v55  ;;  %v1859_v8 = vld [vmem:[%s2824_s1 + $0x3c4] sm:$0xf] }
  0x84   :  { %1129 = vmatpush.bf16.msra.mxu0 %v1674_v47  ;;  %1098 = vmatmul.bf16.vlgmr.msrb.gmra.mxu1 %v2353_v38  ;;  %v1875_v38 = vld [vmem:[%s2824_s1 + $0x444] sm:$0xf]  ;;  %v1650_v1 = vor.u32 %v1859_v8, %v1647_v0  ;;  %v166_v8 = vperm.slane %v163_v31, 1 }
  0x85   :  { %1142 = vmatpush.bf16.msra.mxu1 %v1738_v49  ;;  %1111 = vmatmul.bf16.vlgmr.msrb.gmra.mxu2 %v2377_v50  ;;  %v1711_v50 = vld [vmem:[%s2824_s1 + $0x448] sm:$0xf0] }
  0x86   :  { %1124 = vmatmul.bf16.vlgmr.msrb.gmra.mxu3 %v2355_v40  ;;  %v1714_v2 = vor.u32 %v1875_v38, %v1711_v50  ;;  %v1639_v40 = vld [vmem:[%s2824_s1 + $0x3b8] sm:$0xf0] }
  0x87   :  { %v1642_v6 = vor.u32 %v1857_v3, %v1639_v40 }
  0x88   :  { %1130 = vmatpush.bf16.msra.mxu0 %v1666_v56 }
  0x89   :  { %1143 = vmatpush.bf16.msra.mxu1 %v1730_v57 }
  0x8c   :  { %1131 = vmatpush.bf16.msra.mxu0 %v1658_v62 }
  0x8d   :  { %1144 = vmatpush.bf16.msra.mxu1 %v1722_v63 }
  0x90   :  { %1132 = vmatpush.bf16.msra.mxu0 %v1650_v1 }
  0x91   :  { %1145 = vmatpush.bf16.msra.mxu1 %v1714_v2 }
  0x94   :  { %1133 = vmatpush.bf16.msra.mxu0 %v1642_v6 }
  0x95   :  { %1146 = vmatpush.bf16.msra.mxu1 %v1706_v9 }
  0x98   :  { %1134 = vmatpush.bf16.msra.mxu0 %v1634_v16 }
  0x99   :  { %1147 = vmatpush.bf16.msra.mxu1 %v1698_v18 }
  0x9c   :  { %1135 = vmatpush.bf16.msra.mxu0 %v1626_v23 }
  0x9d   :  { %1148 = vmatpush.bf16.msra.mxu1 %v1690_v24 }
  0xa0   :  { %1136 = vmatpush.bf16.msra.mxu0 %v1618_v29  ;;  %v930_v34 = vpop.f32.mrf.mxu0 }
  0xa1   :  { %1149 = vmatpush.bf16.msra.mxu1 %v1682_v30  ;;  %v943_v33 = vpop.f32.mrf.mxu1  ;;  %v931_v35 = vadd.f32 %v930_v34, %v165_v32 }
  0xa3   :  { %1137 = vmatmul.bf16.vlgmr.msra.gmra.mxu0 %v2363_v44  ;;  %v944_v36 = vadd.f32 %v943_v33, %v931_v35 }
  0xa4   :  { %1150 = vmatmul.bf16.vlgmr.msra.gmra.mxu1 %v2548_v17 }
  0xa8   :  { %v956_v39 = vpop.f32.mrf.mxu2  ;;  %v932_v12 = vpop.f32.mrf.mxu0 }
  0xa9   :  { %v969_v37 = vpop.f32.mrf.mxu3  ;;  %v957_v41 = vadd.f32 %v956_v39, %v944_v36  ;;  %v945_v43 = vpop.f32.mrf.mxu1 }
  0xab   :  { %v970_v42 = vadd.f32 %v969_v37, %v957_v41 }
  0xb0   :  { %v958_v46 = vpop.f32.mrf.mxu2 }
  0xb1   :  { %v971_v45 = vpop.f32.mrf.mxu3 }
  0xc0   :  { %v982_v44 = vpop.f32.mrf.mxu0 }
  0xc1   :  { %v983_v47 = vadd.f32 %v982_v44, %v970_v42  ;;  %v995_v17 = vpop.f32.mrf.mxu1 }
  0xc3   :  { %v996_v48 = vadd.f32 %v995_v17, %v983_v47 }
  0xc8   :  { %v1008_v13 = vpop.f32.mrf.mxu2  ;;  %v984_v52 = vpop.f32.mrf.mxu0 }
  0xc9   :  { %v1009_v49 = vadd.f32 %v1008_v13, %v996_v48  ;;  %v1021_v51 = vpop.f32.mrf.mxu3  ;;  %v997_v7 = vpop.f32.mrf.mxu1 }
  0xcb   :  { %v1022_v53 = vadd.f32 %v1021_v51, %v1009_v49 }
  0xd0   :  { %v1010_v54 = vpop.f32.mrf.mxu2 }
  0xd1   :  { %v1023_v55 = vpop.f32.mrf.mxu3 }
  0xe0   :  { %v1034_v56 = vpop.f32.mrf.mxu0 }
  0xe1   :  { %v1047_v57 = vpop.f32.mrf.mxu1  ;;  %v1035_v18 = vadd.f32 %v1034_v56, %v1022_v53 }
  0xe2   :  { %v1048_v50 = vadd.f32 %v1047_v57, %v166_v8 }
  0xe3   :  { %v1155_v22 = vmax.f32 %v1035_v18, 0.0 }
  0xe8   :  { %v1036_v58 = vpop.f32.mrf.mxu0  ;;  %v1060_v59 = vpop.f32.mrf.mxu2 }
  0xe9   :  { %v1049_v60 = vpop.f32.mrf.mxu1  ;;  %v1073_v61 = vpop.f32.mrf.mxu3  ;;  %v1061_v1 = vadd.f32 %v1060_v59, %v1048_v50 }
  0xeb   :  { %v1074_v5 = vadd.f32 %v1073_v61, %v1061_v1 }
  0xf0   :  { %v1062_v62 = vpop.f32.mrf.mxu2 }
  0xf1   :  { %v1075_v63 = vpop.f32.mrf.mxu3 }
 0x100   :  { %v1086_v0 = vpop.f32.mrf.mxu0 }
 0x101   :  { %v1099_v38 = vpop.f32.mrf.mxu1  ;;  %v1087_v6 = vadd.f32 %v1086_v0, %v1074_v5 }
 0x103   :  { %v1100_v11 = vadd.f32 %v1099_v38, %v1087_v6 }
 0x108   :  { %v1112_v2 = vpop.f32.mrf.mxu2  ;;  %v1088_v3 = vpop.f32.mrf.mxu0 }
 0x109   :  { %v1101_v40 = vpop.f32.mrf.mxu1  ;;  %v1125_v4 = vpop.f32.mrf.mxu3  ;;  %v1113_v14 = vadd.f32 %v1112_v2, %v1100_v11 }
 0x10b   :  { %v1126_v15 = vadd.f32 %v1125_v4, %v1113_v14 }
 0x110   :  { %v1114_v9 = vpop.f32.mrf.mxu2 }
 0x111   :  { %v1127_v10 = vpop.f32.mrf.mxu3 }
 0x120   :  { %v1138_v16 = vpop.f32.mrf.mxu0 }
 0x121   :  { %v1139_v19 = vadd.f32 %v1138_v16, %v1126_v15  ;;  %v1151_v20 = vpop.f32.mrf.mxu1 }
 0x123   :  { %v1152_v21 = vadd.f32 %v1151_v20, %v1139_v19 }
 0x125   :  { %v1156_v23 = vmax.f32 %v1152_v21, 0.0 }
 0x127   :  { %v1157_v24 = vpack.c.bf16 %v1156_v23, %v1155_v22 }
 0x128   :  { %v1140_v25 = vpop.f32.mrf.mxu0 }
 0x129   :  { %1158 = vst [vmem:[%s2827_s3] sm:$0xff] %v1157_v24  ;;  %v1153_v26 = vpop.f32.mrf.mxu1 }

</bundles_post_ra>
